<compile_context>
chip_gen: v5e
topology: v5e:2x2
jax: 0.10.0
libtpu: 0.0.40
codegen_flags: <defaults>
</compile_context>

<pallas_src>
import math
import numpy as np
import jax
import jax.numpy as jnp
from jax import lax
from jax.experimental import pallas as pl
from jax.experimental.pallas import tpu as pltpu

NUM_ROTATIONS = 16
BN_EPS = 1e-5
VMEM_LIMIT = 48 * 1024 * 1024            # scoped VMEM request (v7x-safe, <= 64 MiB)
H_SCRATCH_BYTES_MAX = 24 * 1024 * 1024   # cap for the VMEM-resident h slab


# ----------------------------------------------------------------------------
# Fused push+grasp head: one Pallas kernel, phase grid axis (stats/mid/final)
# ----------------------------------------------------------------------------
def _make_fused_head_kernel(tile_n, n_true, needs_mask):
    inv_n = 1.0 / float(n_true)

    def kernel(x_ref, w0_ref, w1_ref, o_ref,
               s0_ref, q0_ref, s1_ref, q1_ref, h_ref):
        p = pl.program_id(0)     # phase: 0 = x stats, 1 = BN0+conv0, 2 = BN1+conv1
        i = pl.program_id(1)     # tile index over N = B*H*W

        # ---------------- phase 0: per-channel sum / sumsq of x ----------------
        @pl.when(p == 0)
        def _phase_stats():
            @pl.when(i == 0)
            def _init():
                s0_ref[...] = jnp.zeros_like(s0_ref)
                q0_ref[...] = jnp.zeros_like(q0_ref)
                s1_ref[...] = jnp.zeros_like(s1_ref)
                q1_ref[...] = jnp.zeros_like(q1_ref)

            x = x_ref[...].astype(jnp.float32)                    # [T, 2048]
            if needs_mask:   # only emitted when the tail tile can be partial
                row = i * tile_n + lax.broadcasted_iota(jnp.int32, (tile_n, 1), 0)
                x = jnp.where(row < n_true, x, 0.0)
            s0_ref[...] += jnp.sum(x, axis=0, keepdims=True)
            q0_ref[...] += jnp.sum(x * x, axis=0, keepdims=True)

        # ------ phase 0 -> 1 boundary: finalize BN(2048) mean / inv_std --------
        @pl.when((p == 1) & (i == 0))
        def _finalize_bn0():
            mean = s0_ref[...] * inv_n
            var = jnp.maximum(q0_ref[...] * inv_n - mean * mean, 0.0)
            s0_ref[...] = mean
            q0_ref[...] = lax.rsqrt(var + BN_EPS)

        # -------- phase 1: BN(2048)+ReLU, fused conv0 (bf16 MXU), h stats ------
        @pl.when(p == 1)
        def _phase_mid():
            x = x_ref[...].astype(jnp.float32)                    # [T, 2048]
            a = jnp.maximum((x - s0_ref[...]) * q0_ref[...], 0.0)
            h = jnp.dot(a.astype(jnp.bfloat16), w0_ref[...],
                        preferred_element_type=jnp.float32)       # [T, 128] f32
            if needs_mask:   # zero padded rows so they don't pollute BN(128) stats
                row = i * tile_n + lax.broadcasted_iota(jnp.int32, (tile_n, 1), 0)
                h = jnp.where(row < n_true, h, 0.0)
            h_ref[i] = h                                          # VMEM-resident
            s1_ref[...] += jnp.sum(h, axis=0, keepdims=True)
            q1_ref[...] += jnp.sum(h * h, axis=0, keepdims=True)

        # ------ phase 1 -> 2 boundary: finalize BN(128) mean / inv_std ---------
        @pl.when((p == 2) & (i == 0))
        def _finalize_bn1():
            mean = s1_ref[...] * inv_n
            var = jnp.maximum(q1_ref[...] * inv_n - mean * mean, 0.0)
            s1_ref[...] = mean
            q1_ref[...] = lax.rsqrt(var + BN_EPS)

        # ---------- phase 2: BN(128)+ReLU, block-diagonal conv1 (MXU) ----------
        @pl.when(p == 2)
        def _phase_final():
            h = h_ref[i]                                          # [T, 128] f32
            a = jnp.maximum((h - s1_ref[...]) * q1_ref[...], 0.0)
            o_ref[...] = jnp.dot(a.astype(jnp.bfloat16), w1_ref[...],
                                 preferred_element_type=jnp.float32)

    return kernel


def run_fused_heads(x_bf16, w0_cat, w1_blk):
    """x_bf16: [N, 2048] bf16 channels-last features.  Returns [N, 128] f32
    (push output in lanes 0:3, grasp output in lanes 3:6, rest zero)."""
    n, c = x_bf16.shape
    c_mid = w0_cat.shape[1]                                       # 128
    c_out = w1_blk.shape[1]                                       # 128 (lane-dense)

    # 512-row tiles: ~85% of HBM roofline, fits v7x's 64 MiB VMEM comfortably.
    tile_n = min(512, max(8, ((n + 7) // 8) * 8))
    num_tiles = pl.cdiv(n, tile_n)
    needs_mask = (n % tile_n) != 0

    h_bytes = num_tiles * tile_n * c_mid * 4
    if h_bytes > H_SCRATCH_BYTES_MAX:
        # TODO(synk): for very large N spill the intermediate h slab to HBM
        #             (bf16 output + second pallas_call) instead of VMEM scratch.
        raise ValueError(f"h slab ({h_bytes} B) exceeds VMEM budget; N too large")

    kernel = _make_fused_head_kernel(tile_n, n, needs_mask)
    out = pl.pallas_call(
        kernel,
        out_shape=jax.ShapeDtypeStruct((n, c_out), jnp.float32),
        grid=(3, num_tiles),
        in_specs=[
            # x streamed in phases 0/1; phase 2 pins block 0 (no third stream).
            pl.BlockSpec((tile_n, c), lambda p, i: (jnp.where(p == 2, 0, i), 0)),
            pl.BlockSpec((c, c_mid), lambda p, i: (0, 0)),        # stays resident
            pl.BlockSpec((c_mid, c_out), lambda p, i: (0, 0)),    # stays resident
        ],
        # Output block only advances during phase 2 (each block written once).
        out_specs=pl.BlockSpec((tile_n, c_out),
                               lambda p, i: (jnp.where(p == 2, i, 0), 0)),
        scratch_shapes=[
            pltpu.VMEM((1, c), jnp.float32),        # s0: sum(x)   -> mean0
            pltpu.VMEM((1, c), jnp.float32),        # q0: sumsq(x) -> inv_std0
            pltpu.VMEM((1, c_mid), jnp.float32),    # s1: sum(h)   -> mean1
            pltpu.VMEM((1, c_mid), jnp.float32),    # q1: sumsq(h) -> inv_std1
            pltpu.VMEM((num_tiles, tile_n, c_mid), jnp.float32),  # resident h
        ],
        compiler_params=pltpu.CompilerParams(
            dimension_semantics=("arbitrary", "arbitrary"),
            vmem_limit_bytes=VMEM_LIMIT),
        cost_estimate=pl.CostEstimate(
            flops=2 * n * c * c_mid + 2 * n * c_mid * c_out,
            transcendentals=0,
            bytes_accessed=2 * n * c * 2 + n * c_out * 4
                           + c * c_mid * 2 + c_mid * c_out * 2),
    )(x_bf16, w0_cat, w1_blk)
    return out


# ----------------------------------------------------------------------------
# JAX glue: rotation grid_sample, bilinear upsample (align_corners), trunk stub
# ----------------------------------------------------------------------------
def affine_grid_sample(img, theta):
    """F.grid_sample(img, F.affine_grid(theta, img.size())), bilinear, zero
    padding, align_corners=True semantics. img: [B,C,H,W], theta: [2,3]."""
    B, C, H, W = img.shape
    ys = jnp.linspace(-1.0, 1.0, H)
    xs = jnp.linspace(-1.0, 1.0, W)
    gy, gx = jnp.meshgrid(ys, xs, indexing="ij")                  # [H, W]
    x_in = theta[0, 0] * gx + theta[0, 1] * gy + theta[0, 2]
    y_in = theta[1, 0] * gx + theta[1, 1] * gy + theta[1, 2]
    ix = (x_in + 1.0) * (W - 1) / 2.0
    iy = (y_in + 1.0) * (H - 1) / 2.0
    x0 = jnp.floor(ix); x1 = x0 + 1.0
    y0 = jnp.floor(iy); y1 = y0 + 1.0
    wx1 = ix - x0; wx0 = 1.0 - wx1
    wy1 = iy - y0; wy0 = 1.0 - wy1

    def gather(yi, xi):
        valid = (yi >= 0) & (yi <= H - 1) & (xi >= 0) & (xi <= W - 1)
        yc = jnp.clip(yi, 0, H - 1).astype(jnp.int32)
        xc = jnp.clip(xi, 0, W - 1).astype(jnp.int32)
        vals = img[:, :, yc, xc]                                  # [B, C, H, W]
        return vals * valid.astype(img.dtype)

    return (gather(y0, x0) * (wy0 * wx0) + gather(y0, x1) * (wy0 * wx1)
            + gather(y1, x0) * (wy1 * wx0) + gather(y1, x1) * (wy1 * wx1))


def upsample_bilinear_ac(x, scale):
    """nn.Upsample(scale_factor=scale, mode='bilinear', align_corners=True)."""
    B, C, H, W = x.shape
    Ho, Wo = H * scale, W * scale
    ys = jnp.linspace(0.0, H - 1.0, Ho) if H > 1 else jnp.zeros((Ho,))
    xs = jnp.linspace(0.0, W - 1.0, Wo) if W > 1 else jnp.zeros((Wo,))
    y0 = jnp.floor(ys); x0 = jnp.floor(xs)
    y1 = jnp.clip(y0 + 1, 0, H - 1); x1 = jnp.clip(x0 + 1, 0, W - 1)
    wy1 = (ys - y0)[:, None]; wy0 = 1.0 - wy1
    wx1 = (xs - x0)[None, :]; wx0 = 1.0 - wx1
    y0 = y0.astype(jnp.int32); y1 = y1.astype(jnp.int32)
    x0 = x0.astype(jnp.int32); x1 = x1.astype(jnp.int32)
    g = lambda yi, xi: x[:, :, yi[:, None], xi[None, :]]
    return (g(y0, x0) * (wy0 * wx0) + g(y0, x1) * (wy0 * wx1)
            + g(y1, x0) * (wy1 * wx0) + g(y1, x1) * (wy1 * wx1))


def trunk_stub(img, proj_w):
    """Deterministic stand-in for densenet121.features, emitting channels-LAST:
    16x16 avg-pool then 1x1 projection to 1024 ch. [B,3,H,W] -> [B,H/16,W/16,1024]."""
    B, C, H, W = img.shape
    pooled = img.reshape(B, C, H // 16, 16, W // 16, 16).mean(axis=(3, 5))
    return jnp.einsum("bchw,oc->bhwo", pooled, proj_w)


# ----------------------------------------------------------------------------
# Parameters and forward pass (non-volatile branch, specific rotation)
# ----------------------------------------------------------------------------
def make_params():
    key = jax.random.PRNGKey(0)
    k = jax.random.split(key, 6)
    # kaiming_normal_ (fan_in, gain=sqrt(2)) for the 1x1 convs, as in __init__.
    push_w0 = jax.random.normal(k[0], (2048, 64), jnp.float32) * math.sqrt(2.0 / 2048)
    push_w1 = jax.random.normal(k[1], (64, 3), jnp.float32) * math.sqrt(2.0 / 64)
    grasp_w0 = jax.random.normal(k[2], (2048, 64), jnp.float32) * math.sqrt(2.0 / 2048)
    grasp_w1 = jax.random.normal(k[3], (64, 3), jnp.float32) * math.sqrt(2.0 / 64)

    # Fused first conv [2048,128]: push in cols 0:64, grasp in cols 64:128 (bf16 MXU).
    w0_cat = jnp.concatenate([push_w0, grasp_w0], axis=1).astype(jnp.bfloat16)
    # Fused second conv: block-diagonal [128,128]; push rows 0:64 -> cols 0:3,
    # grasp rows 64:128 -> cols 3:6, remaining lanes are zero padding.
    w1_blk = jnp.zeros((128, 128), jnp.float32)
    w1_blk = w1_blk.at[0:64, 0:3].set(push_w1).at[64:128, 3:6].set(grasp_w1)
    w1_blk = w1_blk.astype(jnp.bfloat16)

    proj_color = jax.random.normal(k[4], (1024, 3), jnp.float32) * 0.1
    proj_depth = jax.random.normal(k[5], (1024, 3), jnp.float32) * 0.1
    return dict(w0_cat=w0_cat, w1_blk=w1_blk,
                proj_color=proj_color, proj_depth=proj_depth)


@jax.jit
def _forward_impl(params, input_color, input_depth, theta_before, theta_after):
    rotate_color = affine_grid_sample(input_color, theta_before)
    rotate_depth = affine_grid_sample(input_depth, theta_before)

    # Trunk stubs: color/depth -> 1024 ch each (channels-last), concat -> 2048.
    color_feat = trunk_stub(rotate_color, params["proj_color"])    # [B,h,w,1024]
    depth_feat = trunk_stub(rotate_depth, params["proj_depth"])    # [B,h,w,1024]
    feat_nhwc = jnp.concatenate([color_feat, depth_feat], axis=-1)  # [B,h,w,2048]
    B, Hf, Wf, C = feat_nhwc.shape
    # Head input streamed as bf16 (halves HBM traffic); BN math stays f32 in-kernel.
    x = feat_nhwc.reshape(B * Hf * Wf, C).astype(jnp.bfloat16)      # [N, 2048] bf16

    # Fused push+grasp heads (single Pallas kernel, phased grid).
    # NOTE: the is_volatile branch would stack all 16 rotations along N here
    # to amortize launch/DMA overhead and fill the MXU M dimension.
    out = run_fused_heads(x, params["w0_cat"], params["w1_blk"])    # [N, 128] f32

    def to_nchw(lo, hi):
        return jnp.transpose(out[:, lo:hi].reshape(B, Hf, Wf, 3), (0, 3, 1, 2))

    push_out = to_nchw(0, 3)
    grasp_out = to_nchw(3, 6)

    # Rotate back + x16 bilinear upsample (align_corners=True), tiny 3-ch tensors.
    push_out = upsample_bilinear_ac(affine_grid_sample(push_out, theta_after), 16)
    grasp_out = upsample_bilinear_ac(affine_grid_sample(grasp_out, theta_after), 16)

    # interm_feat returned NCHW (f32) for API parity with the PyTorch module.
    interm = jnp.transpose(feat_nhwc, (0, 3, 1, 2))
    return push_out, grasp_out, interm


def reactive_net_forward(params, input_color, input_depth, specific_rotation):
    rotate_theta = np.radians(specific_rotation * (360.0 / NUM_ROTATIONS))
    theta_before = jnp.asarray(
        [[np.cos(-rotate_theta), np.sin(-rotate_theta), 0.0],
         [-np.sin(-rotate_theta), np.cos(-rotate_theta), 0.0]], jnp.float32)
    theta_after = jnp.asarray(
        [[np.cos(rotate_theta), np.sin(rotate_theta), 0.0],
         [-np.sin(rotate_theta), np.cos(rotate_theta), 0.0]], jnp.float32)

    push_out, grasp_out, interm = _forward_impl(
        params, input_color, input_depth, theta_before, theta_after)

    output_prob = [[push_out, grasp_out]]
    # push and grasp trunks are identical stubs here, so interm feats coincide.
    interm_feat = [[interm, interm]]
    return output_prob, interm_feat


if __name__ == "__main__":
    key = jax.random.PRNGKey(0)
    kc, kd = jax.random.split(key)
    # Small NCHW inputs (color & depth each 3-channel, as densenet expects).
    input_color = jax.random.uniform(kc, (2, 3, 32, 32), jnp.float32)
    input_depth = jax.random.uniform(kd, (2, 3, 32, 32), jnp.float32)

    params = make_params()
    output_prob, interm_feat = reactive_net_forward(
        params, input_color, input_depth, specific_rotation=3)

    push_out, grasp_out = output_prob[0]
    jax.block_until_ready(push_out)
    jax.block_until_ready(grasp_out)

    assert push_out.shape == (2, 3, 32, 32), push_out.shape
    assert grasp_out.shape == (2, 3, 32, 32), grasp_out.shape
    assert interm_feat[0][0].shape == (2, 2048, 2, 2), interm_feat[0][0].shape
    assert bool(jnp.all(jnp.isfinite(push_out))) and bool(jnp.all(jnp.isfinite(grasp_out)))
    print("KERNEL_OK")
</pallas_src>

<mosaic_0001>
module attributes {stable_mosaic.version = 11 : i64} {
  func.func @kernel(%arg0: i32, %arg1: i32, %arg2: memref<8x2048xbf16, #tpu.memory_space<vmem>>, %arg3: memref<2048x128xbf16, #tpu.memory_space<vmem>>, %arg4: memref<128x128xbf16, #tpu.memory_space<vmem>>, %arg5: memref<8x128xf32, #tpu.memory_space<vmem>>, %arg6: memref<1x2048xf32, #tpu.memory_space<vmem>>, %arg7: memref<1x2048xf32, #tpu.memory_space<vmem>>, %arg8: memref<1x128xf32, #tpu.memory_space<vmem>>, %arg9: memref<1x128xf32, #tpu.memory_space<vmem>>, %arg10: memref<1x8x128xf32, #tpu.memory_space<vmem>>) attributes {dimension_semantics = [#tpu.dimension_semantics<arbitrary>, #tpu.dimension_semantics<arbitrary>], iteration_bounds = array<i64: 3, 1>, scalar_prefetch = 0 : i64, scratch_operands = 5 : i64, tpu.core_type = #tpu.core_type<tc>, window_params = [{transform_indices = @transform_0, window_bounds = array<i64: 8, 2048>}, {pipeline_mode = #tpu.pipeline_mode<synchronous>, transform_indices = @transform_1, window_bounds = array<i64: 2048, 128>}, {pipeline_mode = #tpu.pipeline_mode<synchronous>, transform_indices = @transform_2, window_bounds = array<i64: 128, 128>}, {transform_indices = @transform_3, window_bounds = array<i64: 8, 128>}]} {
    %c0_i32 = arith.constant 0 : i32
    %0 = arith.cmpi eq, %arg0, %c0_i32 : i32
    %1 = arith.extui %0 : i1 to i32
    %c0_i32_0 = arith.constant 0 : i32
    %2 = arith.cmpi ne, %1, %c0_i32_0 : i32
    scf.if %2 {
      %c0_i32_9 = arith.constant 0 : i32
      %19 = arith.cmpi eq, %arg1, %c0_i32_9 : i32
      %20 = arith.extui %19 : i1 to i32
      %c0_i32_10 = arith.constant 0 : i32
      %21 = arith.cmpi ne, %20, %c0_i32_10 : i32
      scf.if %21 {
        %cst_21 = arith.constant 0.000000e+00 : f32
        %35 = vector.broadcast %cst_21 : f32 to vector<1x2048xf32>
        %c0_22 = arith.constant 0 : index
        %c0_23 = arith.constant 0 : index
        %36 = vector.load %arg6[%c0_22, %c0_23] : memref<1x2048xf32, #tpu.memory_space<vmem>>, vector<1x2048xf32>
        tpu.vector_store %arg6[%c0_22, %c0_23], %35 {strides = array<i32>} : memref<1x2048xf32, #tpu.memory_space<vmem>>, vector<1x2048xf32>,
        %cst_24 = arith.constant 0.000000e+00 : f32
        %37 = vector.broadcast %cst_24 : f32 to vector<1x2048xf32>
        %c0_25 = arith.constant 0 : index
        %c0_26 = arith.constant 0 : index
        %38 = vector.load %arg7[%c0_25, %c0_26] : memref<1x2048xf32, #tpu.memory_space<vmem>>, vector<1x2048xf32>
        tpu.vector_store %arg7[%c0_25, %c0_26], %37 {strides = array<i32>} : memref<1x2048xf32, #tpu.memory_space<vmem>>, vector<1x2048xf32>,
        %cst_27 = arith.constant 0.000000e+00 : f32
        %39 = vector.broadcast %cst_27 : f32 to vector<1x128xf32>
        %c0_28 = arith.constant 0 : index
        %c0_29 = arith.constant 0 : index
        %40 = vector.load %arg8[%c0_28, %c0_29] : memref<1x128xf32, #tpu.memory_space<vmem>>, vector<1x128xf32>
        tpu.vector_store %arg8[%c0_28, %c0_29], %39 {strides = array<i32>} : memref<1x128xf32, #tpu.memory_space<vmem>>, vector<1x128xf32>,
        %cst_30 = arith.constant 0.000000e+00 : f32
        %41 = vector.broadcast %cst_30 : f32 to vector<1x128xf32>
        %c0_31 = arith.constant 0 : index
        %c0_32 = arith.constant 0 : index
        %42 = vector.load %arg9[%c0_31, %c0_32] : memref<1x128xf32, #tpu.memory_space<vmem>>, vector<1x128xf32>
        tpu.vector_store %arg9[%c0_31, %c0_32], %41 {strides = array<i32>} : memref<1x128xf32, #tpu.memory_space<vmem>>, vector<1x128xf32>,
      } else {
      }
      %c0 = arith.constant 0 : index
      %c0_11 = arith.constant 0 : index
      %22 = vector.load %arg2[%c0, %c0_11] : memref<8x2048xbf16, #tpu.memory_space<vmem>>, vector<8x2048xbf16>
      %23 = arith.extf %22 : vector<8x2048xbf16> to vector<8x2048xf32>
      %c0_12 = arith.constant 0 : index
      %c0_13 = arith.constant 0 : index
      %24 = vector.load %arg6[%c0_12, %c0_13] : memref<1x2048xf32, #tpu.memory_space<vmem>>, vector<1x2048xf32>
      %cst = arith.constant dense<0.000000e+00> : vector<2048xf32>
      %25 = vector.multi_reduction <add>, %23, %cst [0] : vector<8x2048xf32> to vector<2048xf32>
      %26 = vector.shape_cast %25 : vector<2048xf32> to vector<1x2048xf32>
      %27 = arith.addf %24, %26 : vector<1x2048xf32>
      %c0_14 = arith.constant 0 : index
      %c0_15 = arith.constant 0 : index
      %28 = vector.load %arg6[%c0_14, %c0_15] : memref<1x2048xf32, #tpu.memory_space<vmem>>, vector<1x2048xf32>
      tpu.vector_store %arg6[%c0_14, %c0_15], %27 {strides = array<i32>} : memref<1x2048xf32, #tpu.memory_space<vmem>>, vector<1x2048xf32>,
      %c0_16 = arith.constant 0 : index
      %c0_17 = arith.constant 0 : index
      %29 = vector.load %arg7[%c0_16, %c0_17] : memref<1x2048xf32, #tpu.memory_space<vmem>>, vector<1x2048xf32>
      %30 = arith.mulf %23, %23 : vector<8x2048xf32>
      %cst_18 = arith.constant dense<0.000000e+00> : vector<2048xf32>
      %31 = vector.multi_reduction <add>, %30, %cst_18 [0] : vector<8x2048xf32> to vector<2048xf32>
      %32 = vector.shape_cast %31 : vector<2048xf32> to vector<1x2048xf32>
      %33 = arith.addf %29, %32 : vector<1x2048xf32>
      %c0_19 = arith.constant 0 : index
      %c0_20 = arith.constant 0 : index
      %34 = vector.load %arg7[%c0_19, %c0_20] : memref<1x2048xf32, #tpu.memory_space<vmem>>, vector<1x2048xf32>
      tpu.vector_store %arg7[%c0_19, %c0_20], %33 {strides = array<i32>} : memref<1x2048xf32, #tpu.memory_space<vmem>>, vector<1x2048xf32>,
    } else {
    }
    %c1_i32 = arith.constant 1 : i32
    %3 = arith.cmpi eq, %arg0, %c1_i32 : i32
    %c0_i32_1 = arith.constant 0 : i32
    %4 = arith.cmpi eq, %arg1, %c0_i32_1 : i32
    %5 = arith.andi %3, %4 : i1
    %6 = arith.extui %5 : i1 to i32
    %c0_i32_2 = arith.constant 0 : i32
    %7 = arith.cmpi ne, %6, %c0_i32_2 : i32
    scf.if %7 {
      %c0 = arith.constant 0 : index
      %c0_9 = arith.constant 0 : index
      %19 = vector.load %arg6[%c0, %c0_9] : memref<1x2048xf32, #tpu.memory_space<vmem>>, vector<1x2048xf32>
      %cst = arith.constant 1.250000e-01 : f32
      %20 = vector.broadcast %cst : f32 to vector<1x2048xf32>
      %21 = arith.mulf %19, %20 : vector<1x2048xf32>
      %c0_10 = arith.constant 0 : index
      %c0_11 = arith.constant 0 : index
      %22 = vector.load %arg7[%c0_10, %c0_11] : memref<1x2048xf32, #tpu.memory_space<vmem>>, vector<1x2048xf32>
      %cst_12 = arith.constant 1.250000e-01 : f32
      %23 = vector.broadcast %cst_12 : f32 to vector<1x2048xf32>
      %24 = arith.mulf %22, %23 : vector<1x2048xf32>
      %25 = arith.mulf %21, %21 : vector<1x2048xf32>
      %26 = arith.subf %24, %25 : vector<1x2048xf32>
      %cst_13 = arith.constant 0.000000e+00 : f32
      %27 = vector.broadcast %cst_13 : f32 to vector<1x2048xf32>
      %28 = arith.maximumf %26, %27 : vector<1x2048xf32>
      %c0_14 = arith.constant 0 : index
      %c0_15 = arith.constant 0 : index
      %29 = vector.load %arg6[%c0_14, %c0_15] : memref<1x2048xf32, #tpu.memory_space<vmem>>, vector<1x2048xf32>
      tpu.vector_store %arg6[%c0_14, %c0_15], %21 {strides = array<i32>} : memref<1x2048xf32, #tpu.memory_space<vmem>>, vector<1x2048xf32>,
      %cst_16 = arith.constant 9.99999974E-6 : f32
      %30 = vector.broadcast %cst_16 : f32 to vector<1x2048xf32>
      %31 = arith.addf %28, %30 : vector<1x2048xf32>
      %32 = math.rsqrt %31 : vector<1x2048xf32>
      %c0_17 = arith.constant 0 : index
      %c0_18 = arith.constant 0 : index
      %33 = vector.load %arg7[%c0_17, %c0_18] : memref<1x2048xf32, #tpu.memory_space<vmem>>, vector<1x2048xf32>
      tpu.vector_store %arg7[%c0_17, %c0_18], %32 {strides = array<i32>} : memref<1x2048xf32, #tpu.memory_space<vmem>>, vector<1x2048xf32>,
    } else {
    }
    %c1_i32_3 = arith.constant 1 : i32
    %8 = arith.cmpi eq, %arg0, %c1_i32_3 : i32
    %9 = arith.extui %8 : i1 to i32
    %c0_i32_4 = arith.constant 0 : i32
    %10 = arith.cmpi ne, %9, %c0_i32_4 : i32
    scf.if %10 {
      %c0 = arith.constant 0 : index
      %c0_9 = arith.constant 0 : index
      %19 = vector.load %arg2[%c0, %c0_9] : memref<8x2048xbf16, #tpu.memory_space<vmem>>, vector<8x2048xbf16>
      %20 = arith.extf %19 : vector<8x2048xbf16> to vector<8x2048xf32>
      %c0_10 = arith.constant 0 : index
      %c0_11 = arith.constant 0 : index
      %21 = vector.load %arg6[%c0_10, %c0_11] : memref<1x2048xf32, #tpu.memory_space<vmem>>, vector<1x2048xf32>
      %22 = vector.broadcast %21 : vector<1x2048xf32> to vector<8x2048xf32>
      %23 = arith.subf %20, %22 : vector<8x2048xf32>
      %c0_12 = arith.constant 0 : index
      %c0_13 = arith.constant 0 : index
      %24 = vector.load %arg7[%c0_12, %c0_13] : memref<1x2048xf32, #tpu.memory_space<vmem>>, vector<1x2048xf32>
      %25 = vector.broadcast %24 : vector<1x2048xf32> to vector<8x2048xf32>
      %26 = arith.mulf %23, %25 : vector<8x2048xf32>
      %cst = arith.constant 0.000000e+00 : f32
      %27 = vector.broadcast %cst : f32 to vector<8x2048xf32>
      %28 = arith.maximumf %26, %27 : vector<8x2048xf32>
      %29 = arith.truncf %28 : vector<8x2048xf32> to vector<8x2048xbf16>
      %c0_14 = arith.constant 0 : index
      %c0_15 = arith.constant 0 : index
      %30 = vector.load %arg3[%c0_14, %c0_15] : memref<2048x128xbf16, #tpu.memory_space<vmem>>, vector<2048x128xbf16>
      %cst_16 = arith.constant dense<0.000000e+00> : vector<8x128xf32>
      %31 = tpu.matmul %29, %30, %cst_16 {dimension_numbers = #tpu.dot_dimension_numbers<[1], [0], [0], [1], [0, 0, 1, 1], [], []>} : vector<8x2048xbf16>, vector<2048x128xbf16>, vector<8x128xf32> -> vector<8x128xf32>
      %32 = arith.index_cast %arg1 : i32 to index
      %c0_17 = arith.constant 0 : index
      %c0_18 = arith.constant 0 : index
      %33 = vector.load %arg10[%32, %c0_17, %c0_18] : memref<1x8x128xf32, #tpu.memory_space<vmem>>, vector<1x8x128xf32>
      %34 = vector.shape_cast %33 : vector<1x8x128xf32> to vector<8x128xf32>
      %35 = vector.shape_cast %31 : vector<8x128xf32> to vector<1x8x128xf32>
      tpu.vector_store %arg10[%32, %c0_17, %c0_18], %35 {strides = array<i32>} : memref<1x8x128xf32, #tpu.memory_space<vmem>>, vector<1x8x128xf32>,
      %c0_19 = arith.constant 0 : index
      %c0_20 = arith.constant 0 : index
      %36 = vector.load %arg8[%c0_19, %c0_20] : memref<1x128xf32, #tpu.memory_space<vmem>>, vector<1x128xf32>
      %cst_21 = arith.constant dense<0.000000e+00> : vector<128xf32>
      %37 = vector.multi_reduction <add>, %31, %cst_21 [0] : vector<8x128xf32> to vector<128xf32>
      %38 = vector.shape_cast %37 : vector<128xf32> to vector<1x128xf32>
      %39 = arith.addf %36, %38 : vector<1x128xf32>
      %c0_22 = arith.constant 0 : index
      %c0_23 = arith.constant 0 : index
      %40 = vector.load %arg8[%c0_22, %c0_23] : memref<1x128xf32, #tpu.memory_space<vmem>>, vector<1x128xf32>
      tpu.vector_store %arg8[%c0_22, %c0_23], %39 {strides = array<i32>} : memref<1x128xf32, #tpu.memory_space<vmem>>, vector<1x128xf32>,
      %c0_24 = arith.constant 0 : index
      %c0_25 = arith.constant 0 : index
      %41 = vector.load %arg9[%c0_24, %c0_25] : memref<1x128xf32, #tpu.memory_space<vmem>>, vector<1x128xf32>
      %42 = arith.mulf %31, %31 : vector<8x128xf32>
      %cst_26 = arith.constant dense<0.000000e+00> : vector<128xf32>
      %43 = vector.multi_reduction <add>, %42, %cst_26 [0] : vector<8x128xf32> to vector<128xf32>
      %44 = vector.shape_cast %43 : vector<128xf32> to vector<1x128xf32>
      %45 = arith.addf %41, %44 : vector<1x128xf32>
      %c0_27 = arith.constant 0 : index
      %c0_28 = arith.constant 0 : index
      %46 = vector.load %arg9[%c0_27, %c0_28] : memref<1x128xf32, #tpu.memory_space<vmem>>, vector<1x128xf32>
      tpu.vector_store %arg9[%c0_27, %c0_28], %45 {strides = array<i32>} : memref<1x128xf32, #tpu.memory_space<vmem>>, vector<1x128xf32>,
    } else {
    }
    %c2_i32 = arith.constant 2 : i32
    %11 = arith.cmpi eq, %arg0, %c2_i32 : i32
    %c0_i32_5 = arith.constant 0 : i32
    %12 = arith.cmpi eq, %arg1, %c0_i32_5 : i32
    %13 = arith.andi %11, %12 : i1
    %14 = arith.extui %13 : i1 to i32
    %c0_i32_6 = arith.constant 0 : i32
    %15 = arith.cmpi ne, %14, %c0_i32_6 : i32
    scf.if %15 {
      %c0 = arith.constant 0 : index
      %c0_9 = arith.constant 0 : index
      %19 = vector.load %arg8[%c0, %c0_9] : memref<1x128xf32, #tpu.memory_space<vmem>>, vector<1x128xf32>
      %cst = arith.constant 1.250000e-01 : f32
      %20 = vector.broadcast %cst : f32 to vector<1x128xf32>
      %21 = arith.mulf %19, %20 : vector<1x128xf32>
      %c0_10 = arith.constant 0 : index
      %c0_11 = arith.constant 0 : index
      %22 = vector.load %arg9[%c0_10, %c0_11] : memref<1x128xf32, #tpu.memory_space<vmem>>, vector<1x128xf32>
      %cst_12 = arith.constant 1.250000e-01 : f32
      %23 = vector.broadcast %cst_12 : f32 to vector<1x128xf32>
      %24 = arith.mulf %22, %23 : vector<1x128xf32>
      %25 = arith.mulf %21, %21 : vector<1x128xf32>
      %26 = arith.subf %24, %25 : vector<1x128xf32>
      %cst_13 = arith.constant 0.000000e+00 : f32
      %27 = vector.broadcast %cst_13 : f32 to vector<1x128xf32>
      %28 = arith.maximumf %26, %27 : vector<1x128xf32>
      %c0_14 = arith.constant 0 : index
      %c0_15 = arith.constant 0 : index
      %29 = vector.load %arg8[%c0_14, %c0_15] : memref<1x128xf32, #tpu.memory_space<vmem>>, vector<1x128xf32>
      tpu.vector_store %arg8[%c0_14, %c0_15], %21 {strides = array<i32>} : memref<1x128xf32, #tpu.memory_space<vmem>>, vector<1x128xf32>,
      %cst_16 = arith.constant 9.99999974E-6 : f32
      %30 = vector.broadcast %cst_16 : f32 to vector<1x128xf32>
      %31 = arith.addf %28, %30 : vector<1x128xf32>
      %32 = math.rsqrt %31 : vector<1x128xf32>
      %c0_17 = arith.constant 0 : index
      %c0_18 = arith.constant 0 : index
      %33 = vector.load %arg9[%c0_17, %c0_18] : memref<1x128xf32, #tpu.memory_space<vmem>>, vector<1x128xf32>
      tpu.vector_store %arg9[%c0_17, %c0_18], %32 {strides = array<i32>} : memref<1x128xf32, #tpu.memory_space<vmem>>, vector<1x128xf32>,
    } else {
    }
    %c2_i32_7 = arith.constant 2 : i32
    %16 = arith.cmpi eq, %arg0, %c2_i32_7 : i32
    %17 = arith.extui %16 : i1 to i32
    %c0_i32_8 = arith.constant 0 : i32
    %18 = arith.cmpi ne, %17, %c0_i32_8 : i32
    scf.if %18 {
      %19 = arith.index_cast %arg1 : i32 to index
      %c0 = arith.constant 0 : index
      %c0_9 = arith.constant 0 : index
      %20 = vector.load %arg10[%19, %c0, %c0_9] : memref<1x8x128xf32, #tpu.memory_space<vmem>>, vector<1x8x128xf32>
      %21 = vector.shape_cast %20 : vector<1x8x128xf32> to vector<8x128xf32>
      %c0_10 = arith.constant 0 : index
      %c0_11 = arith.constant 0 : index
      %22 = vector.load %arg8[%c0_10, %c0_11] : memref<1x128xf32, #tpu.memory_space<vmem>>, vector<1x128xf32>
      %23 = vector.broadcast %22 : vector<1x128xf32> to vector<8x128xf32>
      %24 = arith.subf %21, %23 : vector<8x128xf32>
      %c0_12 = arith.constant 0 : index
      %c0_13 = arith.constant 0 : index
      %25 = vector.load %arg9[%c0_12, %c0_13] : memref<1x128xf32, #tpu.memory_space<vmem>>, vector<1x128xf32>
      %26 = vector.broadcast %25 : vector<1x128xf32> to vector<8x128xf32>
      %27 = arith.mulf %24, %26 : vector<8x128xf32>
      %cst = arith.constant 0.000000e+00 : f32
      %28 = vector.broadcast %cst : f32 to vector<8x128xf32>
      %29 = arith.maximumf %27, %28 : vector<8x128xf32>
      %30 = arith.truncf %29 : vector<8x128xf32> to vector<8x128xbf16>
      %c0_14 = arith.constant 0 : index
      %c0_15 = arith.constant 0 : index
      %31 = vector.load %arg4[%c0_14, %c0_15] : memref<128x128xbf16, #tpu.memory_space<vmem>>, vector<128x128xbf16>
      %cst_16 = arith.constant dense<0.000000e+00> : vector<8x128xf32>
      %32 = tpu.matmul %30, %31, %cst_16 {dimension_numbers = #tpu.dot_dimension_numbers<[1], [0], [0], [1], [0, 0, 1, 1], [], []>} : vector<8x128xbf16>, vector<128x128xbf16>, vector<8x128xf32> -> vector<8x128xf32>
      %c0_17 = arith.constant 0 : index
      %c0_18 = arith.constant 0 : index
      %33 = vector.load %arg5[%c0_17, %c0_18] : memref<8x128xf32, #tpu.memory_space<vmem>>, vector<8x128xf32>
      tpu.vector_store %arg5[%c0_17, %c0_18], %32 {strides = array<i32>} : memref<8x128xf32, #tpu.memory_space<vmem>>, vector<8x128xf32>,
    } else {
    }
    return
  }
  func.func @transform_0(%arg0: i32, %arg1: i32) -> (i32, i32) {
    %c2_i32 = arith.constant 2 : i32
    %0 = arith.cmpi eq, %arg0, %c2_i32 : i32
    %c0_i32 = arith.constant 0 : i32
    %1 = arith.select %0, %c0_i32, %arg1 : i32
    %c0_i32_0 = arith.constant 0 : i32
    %c0_i32_1 = arith.constant 0 : i32
    return %1, %c0_i32_0 : i32, i32
  }
  func.func @transform_1(%arg0: i32, %arg1: i32) -> (i32, i32) {
    %c0_i32 = arith.constant 0 : i32
    %c0_i32_0 = arith.constant 0 : i32
    %c0_i32_1 = arith.constant 0 : i32
    return %c0_i32, %c0_i32_0 : i32, i32
  }
  func.func @transform_2(%arg0: i32, %arg1: i32) -> (i32, i32) {
    %c0_i32 = arith.constant 0 : i32
    %c0_i32_0 = arith.constant 0 : i32
    %c0_i32_1 = arith.constant 0 : i32
    return %c0_i32, %c0_i32_0 : i32, i32
  }
  func.func @transform_3(%arg0: i32, %arg1: i32) -> (i32, i32) {
    %c2_i32 = arith.constant 2 : i32
    %0 = arith.cmpi eq, %arg0, %c2_i32 : i32
    %c0_i32 = arith.constant 0 : i32
    %1 = arith.select %0, %arg1, %c0_i32 : i32
    %c0_i32_0 = arith.constant 0 : i32
    %c0_i32_1 = arith.constant 0 : i32
    return %1, %c0_i32_0 : i32, i32
  }
}

</mosaic_0001>

<bundles_post_ra>
// kernel: _forward_impl.1
= control target key start
LH: loop header
LB: loop body
LE: loop exit
PB: predicated region body
PF: predicated region fallthrough
CT: control target
= control target key end

     0   :  { %s2993_s12 = smov 0   ;;  %s2995_s13 = smov 0   ;;  %s3650_s0 = inlined_call_operand.vmem [shape: bf16[8,2048], index: 0, kind: input, shape index: {}]   ;;  %s3651_s1 = inlined_call_operand.vmem [shape: bf16[2048,128], index: 1, kind: input, shape index: {}]   ;;  %s3652_s2 = inlined_call_operand.vmem [shape: bf16[128,128], index: 2, kind: input, shape index: {}]   ;;  %s3653_s3 = inlined_call_operand.vmem [shape: f32[8,128], index: 3, kind: output, shape index: {}]  }
   0x1   :  { %s2997_s14 = smov 0  }
   0x2 LB: > { %s25_s15 = sadd.s32 1, %s2966_s13  ;;  %p2223_p0 = scmp.ge.s32.totalorder %s2970_s14, 1  ;;  %s2970_s14 = sphi %s2997_s14, %s13_s14   ;;  %s2966_s13 = sphi %s2995_s13, %s3655_s13   ;;  %s2962_s12 = sphi %s2993_s12, %s3654_s12  }
   0x3   : > { %p27_p1 = scmp.ge.s32.totalorder %s25_s15, 3  ;;  %p161_p2 = scmp.lt.s32.totalorder %s2970_s14, 4 }
   0x5   : > { %s3657_s15 = smov (%p27_p1, %s25_s15), 0  ;;  %p162_p3 = pnand %p2223_p0, %p161_p2 }
   0x6   : > { %p2224_p4 = scmp.ne.s32.totalorder (!%p162_p3), %s2962_s12, 0 }
   0x7   : > { %165 = sbr.rel (%p162_p3) target bundleno = 625 (0x271), region = 32 }
   0xc   : > { %208 = sbr.rel (%p2224_p4) target bundleno = 94 (0x5e), region = 36 }
  0x11   : > { %v219_v0 = vld [vmem:[%s3650_s0] sm:$0xff]  ;;  %v220_v1 = vld [vmem:[%s3650_s0 + $0x8] sm:$0xff]  ;;  %v221_v2 = vld [vmem:[%s3650_s0 + $0x10] sm:$0xff]  ;;  %v2972_v3 = vmov 0.0   ;;  %vm371_vm0 = vcmask 1040384   ;;  %vm373_vm1 = vcmask 1042434  }
  0x12   : > { %217 = vst [vmem:[#allocation4] sm:$0x1] %v2972_v3  ;;  %v222_v4 = vld [vmem:[%s3650_s0 + $0x18] sm:$0xff]  ;;  %v3026_v5 = vunpack.c.l.bf16 %v219_v0  ;;  %v3028_v6 = vunpack.c.h.bf16 %v219_v0  ;;  %v3030_v7 = vunpack.c.l.bf16 %v220_v1  ;;  %v3032_v8 = vunpack.c.h.bf16 %v220_v1 }
  0x13   : > { %218 = vst [vmem:[#allocation5] sm:$0x1] %v2972_v3  ;;  %v3034_v9 = vunpack.c.l.bf16 %v221_v2  ;;  %v3036_v10 = vunpack.c.h.bf16 %v221_v2  ;;  %v3038_v11 = vunpack.c.l.bf16 %v222_v4  ;;  %v3040_v12 = vunpack.c.h.bf16 %v222_v4  ;;  %v223_v4 = vld [vmem:[%s3650_s0 + $0x20] sm:$0xff] }
  0x14   : > { %v245_v13 = vrot.slane %v3026_v5, 4  ;;  %v251_v14 = vrot.slane %v3028_v6, 4  ;;  %v257_v15 = vrot.slane %v3030_v7, 4  ;;  %v263_v16 = vrot.slane %v3032_v8, 4 }
  0x15   : > { %v269_v17 = vrot.slane %v3034_v9, 4  ;;  %v275_v18 = vrot.slane %v3036_v10, 4  ;;  %v281_v19 = vrot.slane %v3038_v11, 4  ;;  %v287_v20 = vrot.slane %v3040_v12, 4 }
  0x16   : > { %v246_v21 = vadd.f32 %v245_v13, %v3026_v5  ;;  %v252_v22 = vadd.f32 %v251_v14, %v3028_v6  ;;  %v258_v23 = vadd.f32 %v257_v15, %v3030_v7  ;;  %v264_v24 = vadd.f32 %v263_v16, %v3032_v8  ;;  %v224_v15 = vld [vmem:[%s3650_s0 + $0x28] sm:$0xff]  ;;  %v225_v16 = vld [vmem:[%s3650_s0 + $0x30] sm:$0xff] }
  0x17   : > { %v270_v25 = vadd.f32 %v269_v17, %v3034_v9  ;;  %v276_v26 = vadd.f32 %v275_v18, %v3036_v10  ;;  %v282_v27 = vadd.f32 %v281_v19, %v3038_v11  ;;  %v288_v28 = vadd.f32 %v287_v20, %v3040_v12  ;;  %v226_v20 = vld [vmem:[%s3650_s0 + $0x38] sm:$0xff] }
  0x18   : > { %v247_v29 = vrot.slane %v246_v21, 2  ;;  %v253_v30 = vrot.slane %v252_v22, 2  ;;  %v259_v31 = vrot.slane %v258_v23, 2  ;;  %v265_v32 = vrot.slane %v264_v24, 2 }
  0x19   : > { %v271_v33 = vrot.slane %v270_v25, 2  ;;  %v277_v34 = vrot.slane %v276_v26, 2  ;;  %v283_v35 = vrot.slane %v282_v27, 2  ;;  %v289_v36 = vrot.slane %v288_v28, 2 }
  0x1a   : > { %v248_v37 = vadd.f32 %v247_v29, %v246_v21  ;;  %v254_v38 = vadd.f32 %v253_v30, %v252_v22  ;;  %v260_v39 = vadd.f32 %v259_v31, %v258_v23  ;;  %v266_v40 = vadd.f32 %v265_v32, %v264_v24 }
  0x1b   : > { %v272_v41 = vadd.f32 %v271_v33, %v270_v25  ;;  %v278_v42 = vadd.f32 %v277_v34, %v276_v26  ;;  %v284_v43 = vadd.f32 %v283_v35, %v282_v27  ;;  %v290_v44 = vadd.f32 %v289_v36, %v288_v28 }
  0x1c   : > { %v249_v45 = vrot.slane %v248_v37, 1  ;;  %v255_v46 = vrot.slane %v254_v38, 1  ;;  %v261_v47 = vrot.slane %v260_v39, 1  ;;  %v267_v48 = vrot.slane %v266_v40, 1 }
  0x1d   : > { %v273_v49 = vrot.slane %v272_v41, 1  ;;  %v279_v50 = vrot.slane %v278_v42, 1  ;;  %v285_v51 = vrot.slane %v284_v43, 1  ;;  %v291_v52 = vrot.slane %v290_v44, 1 }
  0x1e   : > { %v250_v53 = vadd.f32 %v249_v45, %v248_v37  ;;  %v256_v54 = vadd.f32 %v255_v46, %v254_v38  ;;  %v262_v55 = vadd.f32 %v261_v47, %v260_v39  ;;  %v268_v56 = vadd.f32 %v267_v48, %v266_v40 }
  0x1f   : > { %v274_v57 = vadd.f32 %v273_v49, %v272_v41  ;;  %v280_v58 = vadd.f32 %v279_v50, %v278_v42  ;;  %v286_v59 = vadd.f32 %v285_v51, %v284_v43  ;;  %v292_v60 = vadd.f32 %v291_v52, %v290_v44 }
  0x20   : > { %v357_v61 = vrot.slane %v256_v54, 7  ;;  %v358_v62 = vrot.slane %v262_v55, 6  ;;  %v359_v63 = vrot.slane %v268_v56, 5  ;;  %vm375_vm2 = vcmask 1041408  }
  0x21   : > { %v360_v0 = vrot.slane %v274_v57, 4  ;;  %v361_v1 = vrot.slane %v280_v58, 3  ;;  %v362_v2 = vrot.slane %v286_v59, 2  ;;  %v363_v3 = vrot.slane %v292_v60, 1 }
  0x22   : > { %v372_v13 = vsel %vm371_vm0, %v250_v53, %v357_v61  ;;  %v374_v14 = vsel %vm373_vm1, %v358_v62, %v359_v63  ;;  %vm377_vm3 = vcmask 1044484   ;;  %vm379_vm4 = vcmask 1046534  }
  0x23   : > { %v376_v17 = vsel %vm375_vm2, %v372_v13, %v374_v14  ;;  %v378_v18 = vsel %vm377_vm3, %v360_v0, %v361_v1  ;;  %v380_v19 = vsel %vm379_vm4, %v362_v2, %v363_v3  ;;  %vm381_vm5 = vcmask 1045508  }
  0x24   : > { %v382_v21 = vsel %vm381_vm5, %v378_v18, %v380_v19  ;;  %vm383_vm6 = vcmask 1043456   ;;  %v3076_v22 = vunpack.c.l.bf16 %v223_v4  ;;  %v3078_v23 = vunpack.c.h.bf16 %v223_v4 }
  0x25   : > { %v384_v24 = vsel %vm383_vm6, %v376_v17, %v382_v21  ;;  %v3081_v25 = vunpack.c.l.bf16 %v224_v15  ;;  %v3083_v26 = vunpack.c.h.bf16 %v224_v15  ;;  %v3085_v27 = vunpack.c.l.bf16 %v225_v16 }
  0x26   : > { %v3087_v28 = vunpack.c.h.bf16 %v225_v16  ;;  %v3089_v29 = vunpack.c.l.bf16 %v226_v20  ;;  %v3091_v30 = vunpack.c.h.bf16 %v226_v20  ;;  %v293_v31 = vrot.slane %v3076_v22, 4  ;;  %396 = vst [vmem:[#allocation2] sm:$0xff] %v384_v24 }
  0x27   : > { %v299_v32 = vrot.slane %v3078_v23, 4  ;;  %v305_v33 = vrot.slane %v3081_v25, 4  ;;  %v311_v34 = vrot.slane %v3083_v26, 4  ;;  %v317_v35 = vrot.slane %v3085_v27, 4 }
  0x28   : > { %v323_v36 = vrot.slane %v3087_v28, 4  ;;  %v329_v37 = vrot.slane %v3089_v29, 4  ;;  %v335_v38 = vrot.slane %v3091_v30, 4  ;;  %v294_v39 = vadd.f32 %v293_v31, %v3076_v22 }
  0x29   : > { %v300_v40 = vadd.f32 %v299_v32, %v3078_v23  ;;  %v306_v41 = vadd.f32 %v305_v33, %v3081_v25  ;;  %v312_v42 = vadd.f32 %v311_v34, %v3083_v26  ;;  %v318_v43 = vadd.f32 %v317_v35, %v3085_v27 }
  0x2a   : > { %v324_v44 = vadd.f32 %v323_v36, %v3087_v28  ;;  %v330_v45 = vadd.f32 %v329_v37, %v3089_v29  ;;  %v336_v46 = vadd.f32 %v335_v38, %v3091_v30  ;;  %v295_v47 = vrot.slane %v294_v39, 2 }
  0x2b   : > { %v301_v48 = vrot.slane %v300_v40, 2  ;;  %v307_v49 = vrot.slane %v306_v41, 2  ;;  %v313_v50 = vrot.slane %v312_v42, 2  ;;  %v319_v51 = vrot.slane %v318_v43, 2 }
  0x2c   : > { %v325_v52 = vrot.slane %v324_v44, 2  ;;  %v331_v53 = vrot.slane %v330_v45, 2  ;;  %v337_v54 = vrot.slane %v336_v46, 2  ;;  %v296_v55 = vadd.f32 %v295_v47, %v294_v39 }
  0x2d   : > { %v302_v56 = vadd.f32 %v301_v48, %v300_v40  ;;  %v308_v57 = vadd.f32 %v307_v49, %v306_v41  ;;  %v314_v58 = vadd.f32 %v313_v50, %v312_v42  ;;  %v320_v59 = vadd.f32 %v319_v51, %v318_v43 }
  0x2e   : > { %v326_v60 = vadd.f32 %v325_v52, %v324_v44  ;;  %v332_v61 = vadd.f32 %v331_v53, %v330_v45  ;;  %v338_v62 = vadd.f32 %v337_v54, %v336_v46  ;;  %v297_v63 = vrot.slane %v296_v55, 1 }
  0x2f   : > { %v303_v0 = vrot.slane %v302_v56, 1  ;;  %v309_v1 = vrot.slane %v308_v57, 1  ;;  %v315_v2 = vrot.slane %v314_v58, 1  ;;  %v321_v3 = vrot.slane %v320_v59, 1 }
  0x30   : > { %v327_v4 = vrot.slane %v326_v60, 1  ;;  %v333_v13 = vrot.slane %v332_v61, 1  ;;  %v339_v14 = vrot.slane %v338_v62, 1  ;;  %v298_v15 = vadd.f32 %v297_v63, %v296_v55 }
  0x31   : > { %v304_v16 = vadd.f32 %v303_v0, %v302_v56  ;;  %v310_v17 = vadd.f32 %v309_v1, %v308_v57  ;;  %v316_v18 = vadd.f32 %v315_v2, %v314_v58  ;;  %v322_v19 = vadd.f32 %v321_v3, %v320_v59 }
  0x32   : > { %v328_v20 = vadd.f32 %v327_v4, %v326_v60  ;;  %v334_v21 = vadd.f32 %v333_v13, %v332_v61  ;;  %v340_v24 = vadd.f32 %v339_v14, %v338_v62  ;;  %v400_v34 = vmul.f32 %v3026_v5, %v3026_v5 }
  0x33   : > { %v364_v31 = vrot.slane %v304_v16, 7  ;;  %v365_v32 = vrot.slane %v310_v17, 6  ;;  %v366_v33 = vrot.slane %v316_v18, 5  ;;  %v367_v35 = vrot.slane %v322_v19, 4 }
  0x34   : > { %v368_v36 = vrot.slane %v328_v20, 3  ;;  %v369_v37 = vrot.slane %v334_v21, 2  ;;  %v370_v38 = vrot.slane %v340_v24, 1  ;;  %v401_v41 = vmul.f32 %v3028_v6, %v3028_v6 }
  0x35   : > { %v385_v39 = vsel %vm371_vm0, %v298_v15, %v364_v31  ;;  %v386_v40 = vsel %vm373_vm1, %v365_v32, %v366_v33  ;;  %v402_v42 = vmul.f32 %v3030_v7, %v3030_v7  ;;  %v403_v45 = vmul.f32 %v3032_v8, %v3032_v8 }
  0x36   : > { %v387_v43 = vsel %vm375_vm2, %v385_v39, %v386_v40  ;;  %v388_v44 = vsel %vm377_vm3, %v367_v35, %v368_v36  ;;  %v389_v5 = vsel %vm379_vm4, %v369_v37, %v370_v38  ;;  %v404_v47 = vmul.f32 %v3034_v9, %v3034_v9 }
  0x37   : > { %v390_v46 = vsel %vm381_vm5, %v388_v44, %v389_v5  ;;  %v405_v6 = vmul.f32 %v3036_v10, %v3036_v10  ;;  %v406_v7 = vmul.f32 %v3038_v11, %v3038_v11  ;;  %v407_v49 = vmul.f32 %v3040_v12, %v3040_v12 }
  0x38   : > { %v391_v48 = vsel %vm383_vm6, %v387_v43, %v390_v46  ;;  %v416_v50 = vrot.slane %v400_v34, 4  ;;  %v422_v51 = vrot.slane %v401_v41, 4  ;;  %v428_v52 = vrot.slane %v402_v42, 4 }
  0x39   : > { %v434_v8 = vrot.slane %v403_v45, 4  ;;  %v440_v53 = vrot.slane %v404_v47, 4  ;;  %v446_v56 = vrot.slane %v405_v6, 4  ;;  %v452_v9 = vrot.slane %v406_v7, 4  ;;  %397 = vst [vmem:[#allocation2 + $0x8] sm:$0xff] %v391_v48 }
  0x3a   : > { %v417_v54 = vadd.f32 %v416_v50, %v400_v34  ;;  %v423_v55 = vadd.f32 %v422_v51, %v401_v41  ;;  %v429_v57 = vadd.f32 %v428_v52, %v402_v42  ;;  %v458_v59 = vrot.slane %v407_v49, 4 }
  0x3b   : > { %v435_v10 = vadd.f32 %v434_v8, %v403_v45  ;;  %v441_v58 = vadd.f32 %v440_v53, %v404_v47  ;;  %v447_v61 = vadd.f32 %v446_v56, %v405_v6  ;;  %v453_v62 = vadd.f32 %v452_v9, %v406_v7 }
  0x3c   : > { %v418_v11 = vrot.slane %v417_v54, 2  ;;  %v424_v60 = vrot.slane %v423_v55, 2  ;;  %v430_v63 = vrot.slane %v429_v57, 2  ;;  %v459_v1 = vadd.f32 %v458_v59, %v407_v49 }
  0x3d   : > { %v436_v12 = vrot.slane %v435_v10, 2  ;;  %v442_v0 = vrot.slane %v441_v58, 2  ;;  %v448_v4 = vrot.slane %v447_v61, 2  ;;  %v454_v13 = vrot.slane %v453_v62, 2 }
  0x3e   : > { %v419_v2 = vadd.f32 %v418_v11, %v417_v54  ;;  %v425_v3 = vadd.f32 %v424_v60, %v423_v55  ;;  %v431_v14 = vadd.f32 %v430_v63, %v429_v57  ;;  %v460_v17 = vrot.slane %v459_v1, 2 }
  0x3f   : > { %v437_v15 = vadd.f32 %v436_v12, %v435_v10  ;;  %v443_v16 = vadd.f32 %v442_v0, %v441_v58  ;;  %v449_v20 = vadd.f32 %v448_v4, %v447_v61  ;;  %v455_v21 = vadd.f32 %v454_v13, %v453_v62 }
  0x40   : > { %v420_v18 = vrot.slane %v419_v2, 1  ;;  %v426_v19 = vrot.slane %v425_v3, 1  ;;  %v432_v24 = vrot.slane %v431_v14, 1  ;;  %v461_v33 = vadd.f32 %v460_v17, %v459_v1 }
  0x41   : > { %v438_v31 = vrot.slane %v437_v15, 1  ;;  %v444_v32 = vrot.slane %v443_v16, 1  ;;  %v450_v36 = vrot.slane %v449_v20, 1  ;;  %v456_v37 = vrot.slane %v455_v21, 1 }
  0x42   : > { %v421_v34 = vadd.f32 %v420_v18, %v419_v2  ;;  %v427_v35 = vadd.f32 %v426_v19, %v425_v3  ;;  %v433_v38 = vadd.f32 %v432_v24, %v431_v14  ;;  %v462_v41 = vrot.slane %v461_v33, 1 }
  0x43   : > { %v439_v39 = vadd.f32 %v438_v31, %v437_v15  ;;  %v445_v40 = vadd.f32 %v444_v32, %v443_v16  ;;  %v451_v42 = vadd.f32 %v450_v36, %v449_v20  ;;  %v457_v43 = vadd.f32 %v456_v37, %v455_v21 }
  0x44   : > { %v528_v44 = vrot.slane %v427_v35, 7  ;;  %v408_v5 = vmul.f32 %v3076_v22, %v3076_v22  ;;  %v463_v45 = vadd.f32 %v462_v41, %v461_v33  ;;  %v529_v46 = vrot.slane %v433_v38, 6 }
  0x45   : > { %v530_v47 = vrot.slane %v439_v39, 5  ;;  %v531_v6 = vrot.slane %v445_v40, 4  ;;  %v532_v7 = vrot.slane %v451_v42, 3  ;;  %v533_v48 = vrot.slane %v457_v43, 2 }
  0x46   : > { %v542_v49 = vsel %vm371_vm0, %v421_v34, %v528_v44  ;;  %v409_v50 = vmul.f32 %v3078_v23, %v3078_v23  ;;  %v534_v51 = vrot.slane %v463_v45, 1  ;;  %v410_v8 = vmul.f32 %v3081_v25, %v3081_v25 }
  0x47   : > { %v543_v52 = vsel %vm373_vm1, %v529_v46, %v530_v47  ;;  %v411_v22 = vmul.f32 %v3083_v26, %v3083_v26  ;;  %v545_v54 = vsel %vm377_vm3, %v531_v6, %v532_v7  ;;  %v412_v55 = vmul.f32 %v3085_v27, %v3085_v27 }
  0x48   : > { %v544_v53 = vsel %vm375_vm2, %v542_v49, %v543_v52  ;;  %v413_v56 = vmul.f32 %v3087_v28, %v3087_v28  ;;  %v546_v23 = vsel %vm379_vm4, %v533_v48, %v534_v51  ;;  %v414_v9 = vmul.f32 %v3089_v29, %v3089_v29 }
  0x49   : > { %v415_v25 = vmul.f32 %v3091_v30, %v3091_v30  ;;  %v464_v57 = vrot.slane %v408_v5, 4  ;;  %v547_v26 = vsel %vm381_vm5, %v545_v54, %v546_v23  ;;  %v470_v10 = vrot.slane %v409_v50, 4 }
  0x4a   : > { %v476_v58 = vrot.slane %v410_v8, 4  ;;  %v482_v59 = vrot.slane %v411_v22, 4  ;;  %v548_v11 = vsel %vm383_vm6, %v544_v53, %v547_v26  ;;  %v488_v60 = vrot.slane %v412_v55, 4 }
  0x4b   : > { %v465_v27 = vadd.f32 %v464_v57, %v408_v5  ;;  %v494_v61 = vrot.slane %v413_v56, 4  ;;  %v471_v28 = vadd.f32 %v470_v10, %v409_v50  ;;  %v500_v1 = vrot.slane %v414_v9, 4  ;;  %560 = vst [vmem:[#allocation3 + $0x8] sm:$0xff] %v548_v11 }
  0x4c   : > { %v477_v62 = vadd.f32 %v476_v58, %v410_v8  ;;  %v483_v63 = vadd.f32 %v482_v59, %v411_v22  ;;  %v489_v0 = vadd.f32 %v488_v60, %v412_v55  ;;  %v506_v4 = vrot.slane %v415_v25, 4 }
  0x4d   : > { %v466_v12 = vrot.slane %v465_v27, 2  ;;  %v495_v29 = vadd.f32 %v494_v61, %v413_v56  ;;  %v472_v30 = vrot.slane %v471_v28, 2  ;;  %v501_v16 = vadd.f32 %v500_v1, %v414_v9 }
  0x4e   : > { %v478_v2 = vrot.slane %v477_v62, 2  ;;  %v484_v3 = vrot.slane %v483_v63, 2  ;;  %v490_v14 = vrot.slane %v489_v0, 2  ;;  %v507_v20 = vadd.f32 %v506_v4, %v415_v25 }
  0x4f   : > { %v467_v13 = vadd.f32 %v466_v12, %v465_v27  ;;  %v496_v15 = vrot.slane %v495_v29, 2  ;;  %v473_v17 = vadd.f32 %v472_v30, %v471_v28  ;;  %v502_v32 = vrot.slane %v501_v16, 2 }
  0x50   : > { %v479_v18 = vadd.f32 %v478_v2, %v477_v62  ;;  %v485_v19 = vadd.f32 %v484_v3, %v483_v63  ;;  %v491_v24 = vadd.f32 %v490_v14, %v489_v0  ;;  %v508_v36 = vrot.slane %v507_v20, 2 }
  0x51   : > { %v468_v21 = vrot.slane %v467_v13, 1  ;;  %v497_v31 = vadd.f32 %v496_v15, %v495_v29  ;;  %v474_v33 = vrot.slane %v473_v17, 1  ;;  %v503_v40 = vadd.f32 %v502_v32, %v501_v16 }
  0x52   : > { %v480_v34 = vrot.slane %v479_v18, 1  ;;  %v486_v35 = vrot.slane %v485_v19, 1  ;;  %v492_v38 = vrot.slane %v491_v24, 1  ;;  %v509_v44 = vadd.f32 %v508_v36, %v507_v20 }
  0x53   : > { %v469_v37 = vadd.f32 %v468_v21, %v467_v13  ;;  %v498_v39 = vrot.slane %v497_v31, 1  ;;  %v475_v41 = vadd.f32 %v474_v33, %v473_v17  ;;  %v504_v46 = vrot.slane %v503_v40, 1 }
  0x54   : > { %v481_v42 = vadd.f32 %v480_v34, %v479_v18  ;;  %v487_v43 = vadd.f32 %v486_v35, %v485_v19  ;;  %v493_v5 = vadd.f32 %v492_v38, %v491_v24  ;;  %v510_v47 = vrot.slane %v509_v44, 1 }
  0x55   : > { %v499_v45 = vadd.f32 %v498_v39, %v497_v31  ;;  %v535_v6 = vrot.slane %v475_v41, 7  ;;  %v505_v49 = vadd.f32 %v504_v46, %v503_v40 }
  0x56   : > { %v536_v7 = vrot.slane %v481_v42, 6  ;;  %v537_v48 = vrot.slane %v487_v43, 5  ;;  %v538_v50 = vrot.slane %v493_v5, 4  ;;  %v511_v52 = vadd.f32 %v510_v47, %v509_v44 }
  0x57   : > { %v539_v51 = vrot.slane %v499_v45, 3  ;;  %v549_v8 = vsel %vm371_vm0, %v469_v37, %v535_v6  ;;  %v540_v53 = vrot.slane %v505_v49, 2 }
  0x58   : > { %v550_v22 = vsel %vm373_vm1, %v536_v7, %v537_v48  ;;  %v541_v54 = vrot.slane %v511_v52, 1 }
  0x59   : > { %v552_v55 = vsel %vm377_vm3, %v538_v50, %v539_v51  ;;  %v551_v56 = vsel %vm375_vm2, %v549_v8, %v550_v22 }
  0x5a   : > { %v553_v23 = vsel %vm379_vm4, %v540_v53, %v541_v54 }
  0x5b   : > { %v554_v9 = vsel %vm381_vm5, %v552_v55, %v553_v23 }
  0x5c   : > { %v555_v25 = vsel %vm383_vm6, %v551_v56, %v554_v9 }
  0x5d   : > { %561 = vst [vmem:[#allocation3] sm:$0xff] %v555_v25 }
  0x5e PF: > { %p562_p5 = scmp.eq.s32.totalorder %s2962_s12, 1 }
  0x5f   : > { %v568_v57 = vld [vmem:[#allocation2] sm:$0xff] (%p562_p5)  ;;  %v569_v26 = vld [vmem:[#allocation2 + $0x8] sm:$0xff] (%p562_p5)  ;;  %v572_v10 = vld [vmem:[#allocation3 + $0x8] sm:$0xff] (%p562_p5) }
  0x60   : > { %567 = sbr.rel (!%p562_p5) target bundleno = 128 (0x80), region = 44  ;;  %v570_v58 = vmul.f32 (%p562_p5), 0.125, %v568_v57  ;;  %v571_v59 = vmul.f32 (%p562_p5), 0.125, %v569_v26  ;;  %v574_v11 = vmul.f32 (%p562_p5), 0.125, %v572_v10 }
  0x62   : > { %v576_v61 = vmul.f32 (%p562_p5), %v570_v58, %v570_v58  ;;  %582 = vst [vmem:[#allocation2] sm:$0xff] (%p562_p5), %v570_v58  ;;  %v577_v28 = vmul.f32 (%p562_p5), %v571_v59, %v571_v59 }
  0x63   : > { %583 = vst [vmem:[#allocation2 + $0x8] sm:$0xff] (%p562_p5), %v571_v59 }
  0x64   : > { %v573_v27 = vld [vmem:[#allocation3] sm:$0xff] (%p562_p5)  ;;  %v578_v62 = vsub.f32 (%p562_p5), %v574_v11, %v576_v61 }
  0x65   : > { %v575_v60 = vmul.f32 0.125, %v573_v27 }
  0x66   : > { %v580_v12 = vmax.f32 %v578_v62, 0.0 }
  0x67   : > { %v579_v63 = vsub.f32 %v575_v60, %v577_v28 }
  0x68   : > { %v584_v29 = vadd.f32 1e-05, %v580_v12 }
  0x69   : > { %v581_v0 = vmax.f32 %v579_v63, 0.0 }
  0x6a   : > { %2940 = vrsqrt.f32 %v584_v29  ;;  %vm592_vm7 = vweird.f32 %v584_v29 }
  0x6b   : > { %v585_v1 = vadd.f32 1e-05, %v581_v0 }
  0x6d   : > { %2942 = vrsqrt.f32 %v585_v1  ;;  %vm602_vm9 = vweird.f32 %v585_v1 }
  0x70   : > { %v2941_v30 = vpop.eup %2940 }
  0x71   : > { %v587_v3 = vmul.f32 %v2941_v30, %v584_v29  ;;  %vm593_vm8 = vweird.f32 %v2941_v30 }
  0x72   : > { %vm594_vm11 = vmor %vm592_vm7, %vm593_vm8 }
  0x73   : > { %v2943_v2 = vpop.eup %2942  ;;  %v588_v13 = vmul.f32 %v2941_v30, %v587_v3 }
  0x74   : > { %v597_v4 = vmul.f32 %v2943_v2, %v585_v1  ;;  %vm603_vm10 = vweird.f32 %v2943_v2 }
  0x75   : > { %v589_v15 = vmul.f32 0.5, %v588_v13  ;;  %vm604_vm12 = vmor %vm602_vm9, %vm603_vm10 }
  0x76   : > { %v598_v14 = vmul.f32 %v2943_v2, %v597_v4 }
  0x77   : > { %v590_v17 = vsub.f32 1.5, %v589_v15 }
  0x78   : > { %v599_v16 = vmul.f32 0.5, %v598_v14 }
  0x79   : > { %v591_v19 = vmul.f32 %v2941_v30, %v590_v17 }
  0x7a   : > { %v600_v18 = vsub.f32 1.5, %v599_v16 }
  0x7b   : > { %v595_v21 = vsel %vm594_vm11, %v2941_v30, %v591_v19 }
  0x7c   : > { %v601_v20 = vmul.f32 %v2943_v2, %v600_v18  ;;  %606 = vst [vmem:[#allocation3 + $0x8] sm:$0xff] %v595_v21 }
  0x7e   : > { %v605_v24 = vsel %vm604_vm12, %v2943_v2, %v601_v20 }
  0x7f   : > { %607 = vst [vmem:[#allocation3] sm:$0xff] %v605_v24 }
  0x80 PF: > { %p2226_p6 = scmp.ne.s32.totalorder %s2962_s12, 1 }
  0x82   : > { %610 = sbr.rel (%p2226_p6) target bundleno = 418 (0x1a2), region = 48 }
  0x87   : > { %v2785_v31 = vld [vmem:[%s3651_s1 + $0x38] sm:$0xff]  ;;  %v2784_v35 = vld [vmem:[%s3651_s1 + $0x30] sm:$0xff]  ;;  %v2783_v39 = vld [vmem:[%s3651_s1 + $0x28] sm:$0xff] }
  0x88   : > { %v2793_v32 = vld [vmem:[%s3651_s1 + $0x78] sm:$0xff]  ;;  %1795 = vmatpush.bf16.msra.mxu0 %v2785_v31  ;;  %v2792_v36 = vld [vmem:[%s3651_s1 + $0x70] sm:$0xff]  ;;  %v2791_v40 = vld [vmem:[%s3651_s1 + $0x68] sm:$0xff] }
  0x89   : > { %v2801_v33 = vld [vmem:[%s3651_s1 + $0xb8] sm:$0xff]  ;;  %1808 = vmatpush.bf16.msra.mxu1 %v2793_v32  ;;  %v2800_v37 = vld [vmem:[%s3651_s1 + $0xb0] sm:$0xff]  ;;  %v2799_v41 = vld [vmem:[%s3651_s1 + $0xa8] sm:$0xff] }
  0x8a   : > { %v2809_v34 = vld [vmem:[%s3651_s1 + $0xf8] sm:$0xff]  ;;  %1821 = vmatpush.bf16.msra.mxu2 %v2801_v33  ;;  %v2808_v38 = vld [vmem:[%s3651_s1 + $0xf0] sm:$0xff]  ;;  %v2807_v42 = vld [vmem:[%s3651_s1 + $0xe8] sm:$0xff] }
  0x8b   : > { %1834 = vmatpush.bf16.msra.mxu3 %v2809_v34  ;;  %v2782_v43 = vld [vmem:[%s3651_s1 + $0x20] sm:$0xff]  ;;  %v2781_v46 = vld [vmem:[%s3651_s1 + $0x18] sm:$0xff]  ;;  %v2780_v48 = vld [vmem:[%s3651_s1 + $0x10] sm:$0xff] }
  0x8c   : > { %1796 = vmatpush.bf16.msra.mxu0 %v2784_v35  ;;  %v2790_v44 = vld [vmem:[%s3651_s1 + $0x60] sm:$0xff]  ;;  %v2789_v47 = vld [vmem:[%s3651_s1 + $0x58] sm:$0xff]  ;;  %v612_v49 = vld [vmem:[%s3650_s0 + $0x8] sm:$0xff] }
  0x8d   : > { %1809 = vmatpush.bf16.msra.mxu1 %v2792_v36  ;;  %v2798_v5 = vld [vmem:[%s3651_s1 + $0xa0] sm:$0xff]  ;;  %v2797_v6 = vld [vmem:[%s3651_s1 + $0x98] sm:$0xff]  ;;  %v2788_v51 = vld [vmem:[%s3651_s1 + $0x50] sm:$0xff]  ;;  %v621_v52 = vunpack.c.l.bf16 %v612_v49  ;;  %v622_v55 = vunpack.c.h.bf16 %v612_v49 }
  0x8e   : > { %1822 = vmatpush.bf16.msra.mxu2 %v2800_v37  ;;  %v2806_v45 = vld [vmem:[%s3651_s1 + $0xe0] sm:$0xff]  ;;  %v2805_v7 = vld [vmem:[%s3651_s1 + $0xd8] sm:$0xff]  ;;  %v2796_v56 = vld [vmem:[%s3651_s1 + $0x90] sm:$0xff] }
  0x8f   : > { %1835 = vmatpush.bf16.msra.mxu3 %v2808_v38  ;;  %v3230_v50 = vld [vmem:[#allocation2] sm:$0xff]  ;;  %v3236_v22 = vld [vmem:[#allocation3 + $0x8] sm:$0xff]  ;;  %v2804_v23 = vld [vmem:[%s3651_s1 + $0xd0] sm:$0xff] }
  0x90   : > { %1797 = vmatpush.bf16.msra.mxu0 %v2783_v39  ;;  %v641_v8 = vperm.slane %v3230_v50, 2  ;;  %v611_v53 = vld [vmem:[%s3650_s0] sm:$0xff]  ;;  %v639_v54 = vperm.slane %v3230_v50, 0  ;;  %v693_v9 = vperm.slane %v3236_v22, 2  ;;  %v691_v57 = vperm.slane %v3236_v22, 0  ;;  %v2779_v28 = vld [vmem:[%s3651_s1 + $0x8] sm:$0xff] }
  0x91   : > { %1810 = vmatpush.bf16.msra.mxu1 %v2791_v40  ;;  %v619_v25 = vunpack.c.l.bf16 %v611_v53  ;;  %v642_v26 = vperm.slane %v3230_v50, 3  ;;  %v694_v58 = vperm.slane %v3236_v22, 3  ;;  %v620_v59 = vunpack.c.h.bf16 %v611_v53  ;;  %v2787_v62 = vld [vmem:[%s3651_s1 + $0x48] sm:$0xff]  ;;  %v2778_v3 = vld [vmem:[%s3651_s1] sm:$0xff]  ;;  %v2817_v19 = vld [vmem:[%s3651_s1 + $0x138] sm:$0xff] }
  0x92   : > { %1823 = vmatpush.bf16.msra.mxu2 %v2799_v41  ;;  %v673_v10 = vsub.f32 %v621_v52, %v641_v8  ;;  %v640_v11 = vperm.slane %v3230_v50, 1  ;;  %v692_v61 = vperm.slane %v3236_v22, 1  ;;  %v2795_v0 = vld [vmem:[%s3651_s1 + $0x88] sm:$0xff]  ;;  %v2786_v4 = vld [vmem:[%s3651_s1 + $0x40] sm:$0xff]  ;;  %v2825_v20 = vld [vmem:[%s3651_s1 + $0x178] sm:$0xff]  ;;  %v645_v49 = vperm.slane %v3230_v50, 6 }
  0x93   : > { %1836 = vmatpush.bf16.msra.mxu3 %v2807_v42  ;;  %v671_v27 = vsub.f32 %v619_v25, %v639_v54  ;;  %v674_v60 = vsub.f32 %v622_v55, %v642_v26  ;;  %v2803_v29 = vld [vmem:[%s3651_s1 + $0xc8] sm:$0xff]  ;;  %v2794_v15 = vld [vmem:[%s3651_s1 + $0x80] sm:$0xff]  ;;  %v2833_v21 = vld [vmem:[%s3651_s1 + $0x1b8] sm:$0xff]  ;;  %v643_v52 = vperm.slane %v3230_v50, 4  ;;  %v646_v55 = vperm.slane %v3230_v50, 7 }
  0x94   : > { %1798 = vmatpush.bf16.msra.mxu0 %v2782_v43  ;;  %v725_v63 = vmul.f32 %v693_v9, %v673_v10  ;;  %v672_v12 = vsub.f32 %v620_v59, %v640_v11  ;;  %v2802_v16 = vld [vmem:[%s3651_s1 + $0xc0] sm:$0xff]  ;;  %v2841_v24 = vld [vmem:[%s3651_s1 + $0x1f8] sm:$0xff]  ;;  %v2816_v35 = vld [vmem:[%s3651_s1 + $0x130] sm:$0xff]  ;;  %v697_v26 = vperm.slane %v3236_v22, 6 }
  0x95   : > { %1811 = vmatpush.bf16.msra.mxu1 %v2790_v44  ;;  %v723_v1 = vmul.f32 %v691_v57, %v671_v27  ;;  %v726_v30 = vmul.f32 %v694_v58, %v674_v60  ;;  %v2824_v36 = vld [vmem:[%s3651_s1 + $0x170] sm:$0xff]  ;;  %v2815_v39 = vld [vmem:[%s3651_s1 + $0x128] sm:$0xff]  ;;  %v2814_v43 = vld [vmem:[%s3651_s1 + $0x120] sm:$0xff]  ;;  %v695_v58 = vperm.slane %v3236_v22, 4  ;;  %v698_v27 = vperm.slane %v3236_v22, 7 }
  0x96   : > { %1824 = vmatpush.bf16.msra.mxu2 %v2798_v5  ;;  %v724_v2 = vmul.f32 %v692_v61, %v672_v12  ;;  %v741_v13 = vmax.f32 %v725_v63, 0.0  ;;  %v2832_v37 = vld [vmem:[%s3651_s1 + $0x1b0] sm:$0xff]  ;;  %v2823_v40 = vld [vmem:[%s3651_s1 + $0x168] sm:$0xff]  ;;  %v2822_v44 = vld [vmem:[%s3651_s1 + $0x160] sm:$0xff]  ;;  %v696_v61 = vperm.slane %v3236_v22, 5 }
  0x97   : > { %1837 = vmatpush.bf16.msra.mxu3 %v2806_v45  ;;  %v739_v14 = vmax.f32 %v723_v1, 0.0  ;;  %v742_v17 = vmax.f32 %v726_v30, 0.0  ;;  %v2840_v38 = vld [vmem:[%s3651_s1 + $0x1f0] sm:$0xff]  ;;  %v2831_v41 = vld [vmem:[%s3651_s1 + $0x1a8] sm:$0xff]  ;;  %v2830_v5 = vld [vmem:[%s3651_s1 + $0x1a0] sm:$0xff] }
  0x98   : > { %1799 = vmatpush.bf16.msra.mxu0 %v2781_v46  ;;  %v740_v18 = vmax.f32 %v724_v2, 0.0  ;;  %v757_v31 = vpack.c.bf16 %v741_v13, %v741_v13  ;;  %v2839_v42 = vld [vmem:[%s3651_s1 + $0x1e8] sm:$0xff]  ;;  %v2838_v45 = vld [vmem:[%s3651_s1 + $0x1e0] sm:$0xff]  ;;  %v614_v46 = vld [vmem:[%s3650_s0 + $0x18] sm:$0xff] }
  0x99   : > { %1812 = vmatpush.bf16.msra.mxu1 %v2789_v47  ;;  %v755_v32 = vpack.c.bf16 %v739_v14, %v739_v14  ;;  %v758_v33 = vpack.c.bf16 %v742_v17, %v742_v17  ;;  %v613_v47 = vld [vmem:[%s3650_s0 + $0x10] sm:$0xff]  ;;  %v2829_v8 = vld [vmem:[%s3651_s1 + $0x198] sm:$0xff]  ;;  %v626_v54 = vunpack.c.h.bf16 %v614_v46  ;;  %v2835_v22 = vld [vmem:[%s3651_s1 + $0x1c8] sm:$0xff] }
  0x9a   : > { %1825 = vmatpush.bf16.msra.mxu2 %v2797_v6  ;;  %v756_v34 = vpack.c.bf16 %v740_v18, %v740_v18  ;;  %v2813_v6 = vld [vmem:[%s3651_s1 + $0x118] sm:$0xff]  ;;  %v2812_v9 = vld [vmem:[%s3651_s1 + $0x110] sm:$0xff]  ;;  %v2810_v30 = vld [vmem:[%s3651_s1 + $0x100] sm:$0xff] }
  0x9b   : > { %1838 = vmatpush.bf16.msra.mxu3 %v2805_v7  ;;  %v2821_v7 = vld [vmem:[%s3651_s1 + $0x158] sm:$0xff]  ;;  %v2820_v25 = vld [vmem:[%s3651_s1 + $0x150] sm:$0xff]  ;;  %v678_v11 = vsub.f32 %v626_v54, %v646_v55  ;;  %v2818_v2 = vld [vmem:[%s3651_s1 + $0x140] sm:$0xff] }
  0x9c   : > { %1800 = vmatpush.bf16.msra.mxu0 %v2780_v48  ;;  %v625_v48 = vunpack.c.l.bf16 %v614_v46  ;;  %v2837_v53 = vld [vmem:[%s3651_s1 + $0x1d8] sm:$0xff]  ;;  %v2836_v59 = vld [vmem:[%s3651_s1 + $0x1d0] sm:$0xff]  ;;  %v2826_v13 = vld [vmem:[%s3651_s1 + $0x180] sm:$0xff] }
  0x9d   : > { %1813 = vmatpush.bf16.msra.mxu1 %v2788_v51  ;;  %v623_v51 = vunpack.c.l.bf16 %v613_v47  ;;  %v2834_v14 = vld [vmem:[%s3651_s1 + $0x1c0] sm:$0xff]  ;;  %v2849_v17 = vld [vmem:[%s3651_s1 + $0x238] sm:$0xff]  ;;  %v616_v46 = vld [vmem:[%s3650_s0 + $0x28] sm:$0xff] }
  0x9e   : > { %1826 = vmatpush.bf16.msra.mxu2 %v2796_v56  ;;  %v624_v56 = vunpack.c.h.bf16 %v613_v47  ;;  %v677_v57 = vsub.f32 %v625_v48, %v645_v49  ;;  %v2857_v18 = vld [vmem:[%s3651_s1 + $0x278] sm:$0xff]  ;;  %v629_v49 = vunpack.c.l.bf16 %v616_v46 }
  0x9f   : > { %1839 = vmatpush.bf16.msra.mxu3 %v2804_v23  ;;  %v644_v23 = vperm.slane %v3230_v50, 5  ;;  %v675_v10 = vsub.f32 %v623_v51, %v643_v52  ;;  %v2828_v50 = vld [vmem:[%s3651_s1 + $0x190] sm:$0xff]  ;;  %v2845_v47 = vld [vmem:[%s3651_s1 + $0x218] sm:$0xff] }
  0xa0   : > { %1801 = vmatpush.bf16.msra.mxu0 %v2779_v28  ;;  %v2811_v28 = vld [vmem:[%s3651_s1 + $0x108] sm:$0xff]  ;;  %v729_v63 = vmul.f32 %v697_v26, %v677_v57  ;;  %v2861_v52 = vld [vmem:[%s3651_s1 + $0x298] sm:$0xff] }
  0xa1   : > { %1814 = vmatpush.bf16.msra.mxu1 %v2787_v62  ;;  %v676_v60 = vsub.f32 %v624_v56, %v644_v23  ;;  %v2819_v62 = vld [vmem:[%s3651_s1 + $0x148] sm:$0xff]  ;;  %v727_v12 = vmul.f32 %v695_v58, %v675_v10  ;;  %v630_v56 = vunpack.c.h.bf16 %v616_v46  ;;  %v618_v46 = vld [vmem:[%s3650_s0 + $0x38] sm:$0xff] }
  0xa2   : > { %1827 = vmatpush.bf16.msra.mxu2 %v2795_v0  ;;  %v2827_v0 = vld [vmem:[%s3651_s1 + $0x188] sm:$0xff] }
  0xa3   : > { %1840 = vmatpush.bf16.msra.mxu3 %v2803_v29  ;;  %v730_v29 = vmul.f32 %v698_v27, %v678_v11  ;;  %v728_v1 = vmul.f32 %v696_v61, %v676_v60 }
  0xa4   : > { %1802 = vmatpush.bf16.msra.mxu0 %v2778_v3  ;;  %v745_v3 = vmax.f32 %v729_v63, 0.0 }
  0xa5   : > { %1815 = vmatpush.bf16.msra.mxu1 %v2786_v4  ;;  %v743_v4 = vmax.f32 %v727_v12, 0.0 }
  0xa6   : > { %1828 = vmatpush.bf16.msra.mxu2 %v2794_v15  ;;  %v746_v15 = vmax.f32 %v730_v29, 0.0 }
  0xa7   : > { %1841 = vmatpush.bf16.msra.mxu3 %v2802_v16  ;;  %1803 = vmatmul.bf16.vlgmr.msra.gmra.mxu0 %v755_v32  ;;  %v744_v16 = vmax.f32 %v728_v1, 0.0 }
  0xa8   : > { %1847 = vmatpush.bf16.msrb.mxu0 %v2817_v19  ;;  %1816 = vmatmul.bf16.vlgmr.msra.gmra.mxu1 %v756_v34  ;;  %v2865_v19 = vld [vmem:[%s3651_s1 + $0x2b8] sm:$0xff]  ;;  %v2856_v34 = vld [vmem:[%s3651_s1 + $0x270] sm:$0xff] }
  0xa9   : > { %1860 = vmatpush.bf16.msrb.mxu1 %v2825_v20  ;;  %1829 = vmatmul.bf16.vlgmr.msra.gmra.mxu2 %v757_v31  ;;  %v2873_v20 = vld [vmem:[%s3651_s1 + $0x2f8] sm:$0xff]  ;;  %v762_v31 = vpack.c.bf16 %v746_v15, %v746_v15  ;;  %v760_v32 = vpack.c.bf16 %v744_v16, %v744_v16 }
  0xaa   : > { %1873 = vmatpush.bf16.msrb.mxu2 %v2833_v21  ;;  %1842 = vmatmul.bf16.vlgmr.msra.gmra.mxu3 %v758_v33  ;;  %v761_v21 = vpack.c.bf16 %v745_v3, %v745_v3  ;;  %v2848_v33 = vld [vmem:[%s3651_s1 + $0x230] sm:$0xff] }
  0xab   : > { %1886 = vmatpush.bf16.msrb.mxu3 %v2841_v24  ;;  %v759_v24 = vpack.c.bf16 %v743_v4, %v743_v4 }
  0xac   : > { %1848 = vmatpush.bf16.msrb.mxu0 %v2816_v35  ;;  %v2864_v35 = vld [vmem:[%s3651_s1 + $0x2b0] sm:$0xff] }
  0xad   : > { %1861 = vmatpush.bf16.msrb.mxu1 %v2824_v36  ;;  %v2872_v36 = vld [vmem:[%s3651_s1 + $0x2f0] sm:$0xff] }
  0xae   : > { %1874 = vmatpush.bf16.msrb.mxu2 %v2832_v37  ;;  %v2847_v37 = vld [vmem:[%s3651_s1 + $0x228] sm:$0xff] }
  0xaf   : > { %1887 = vmatpush.bf16.msrb.mxu3 %v2840_v38  ;;  %v2855_v38 = vld [vmem:[%s3651_s1 + $0x268] sm:$0xff] }
  0xb0   : > { %1849 = vmatpush.bf16.msrb.mxu0 %v2815_v39  ;;  %v2863_v39 = vld [vmem:[%s3651_s1 + $0x2a8] sm:$0xff] }
  0xb1   : > { %1862 = vmatpush.bf16.msrb.mxu1 %v2823_v40  ;;  %v2871_v40 = vld [vmem:[%s3651_s1 + $0x2e8] sm:$0xff] }
  0xb2   : > { %1875 = vmatpush.bf16.msrb.mxu2 %v2831_v41  ;;  %v2846_v41 = vld [vmem:[%s3651_s1 + $0x220] sm:$0xff] }
  0xb3   : > { %1888 = vmatpush.bf16.msrb.mxu3 %v2839_v42  ;;  %v2854_v42 = vld [vmem:[%s3651_s1 + $0x260] sm:$0xff] }
  0xb4   : > { %1850 = vmatpush.bf16.msrb.mxu0 %v2814_v43  ;;  %v2862_v43 = vld [vmem:[%s3651_s1 + $0x2a0] sm:$0xff] }
  0xb5   : > { %1863 = vmatpush.bf16.msrb.mxu1 %v2822_v44  ;;  %v2870_v44 = vld [vmem:[%s3651_s1 + $0x2e0] sm:$0xff] }
  0xb6   : > { %1876 = vmatpush.bf16.msrb.mxu2 %v2830_v5  ;;  %v615_v5 = vld [vmem:[%s3650_s0 + $0x20] sm:$0xff] }
  0xb7   : > { %1889 = vmatpush.bf16.msrb.mxu3 %v2838_v45  ;;  %v3439_v45 = vld [vmem:[#allocation2 + $0x8] sm:$0xff]  ;;  %v628_v54 = vunpack.c.h.bf16 %v615_v5 }
  0xb8   : > { %1851 = vmatpush.bf16.msrb.mxu0 %v2813_v6  ;;  %v2853_v6 = vld [vmem:[%s3651_s1 + $0x258] sm:$0xff]  ;;  %v647_v48 = vperm.slane %v3439_v45, 0  ;;  %v649_v51 = vperm.slane %v3439_v45, 2  ;;  %v648_v55 = vperm.slane %v3439_v45, 1  ;;  %v650_v23 = vperm.slane %v3439_v45, 3 }
  0xb9   : > { %1864 = vmatpush.bf16.msrb.mxu1 %v2821_v7  ;;  %v627_v7 = vunpack.c.l.bf16 %v615_v5  ;;  %v2902_v5 = vld [vmem:[%s3651_s1 + $0x3e0] sm:$0xff] }
  0xba   : > { %1877 = vmatpush.bf16.msrb.mxu2 %v2829_v8  ;;  %v2869_v8 = vld [vmem:[%s3651_s1 + $0x2d8] sm:$0xff]  ;;  %v681_v10 = vsub.f32 %v629_v49, %v649_v51  ;;  %v680_v11 = vsub.f32 %v628_v54, %v648_v55  ;;  %v682_v60 = vsub.f32 %v630_v56, %v650_v23  ;;  %v634_v54 = vunpack.c.h.bf16 %v618_v46 }
  0xbb   : > { %1890 = vmatpush.bf16.msrb.mxu3 %v2837_v53  ;;  %v3458_v53 = vld [vmem:[#allocation3] sm:$0xff]  ;;  %v679_v57 = vsub.f32 %v627_v7, %v647_v48  ;;  %v652_v48 = vperm.slane %v3439_v45, 5  ;;  %v2877_v49 = vld [vmem:[%s3651_s1 + $0x318] sm:$0xff]  ;;  %v654_v55 = vperm.slane %v3439_v45, 7 }
  0xbc   : > { %1852 = vmatpush.bf16.msrb.mxu0 %v2812_v9  ;;  %v2844_v9 = vld [vmem:[%s3651_s1 + $0x210] sm:$0xff]  ;;  %v699_v26 = vperm.slane %v3458_v53, 0  ;;  %v701_v58 = vperm.slane %v3458_v53, 2  ;;  %v700_v27 = vperm.slane %v3458_v53, 1  ;;  %v702_v61 = vperm.slane %v3458_v53, 3  ;;  %v2885_v51 = vld [vmem:[%s3651_s1 + $0x358] sm:$0xff] }
  0xbd   : > { %1865 = vmatpush.bf16.msrb.mxu1 %v2820_v25  ;;  %v2852_v25 = vld [vmem:[%s3651_s1 + $0x250] sm:$0xff]  ;;  %v2893_v56 = vld [vmem:[%s3651_s1 + $0x398] sm:$0xff] }
  0xbe   : > { %1878 = vmatpush.bf16.msrb.mxu2 %v2828_v50  ;;  %v2860_v50 = vld [vmem:[%s3651_s1 + $0x290] sm:$0xff]  ;;  %v731_v63 = vmul.f32 %v699_v26, %v679_v57  ;;  %v733_v12 = vmul.f32 %v701_v58, %v681_v10  ;;  %v732_v29 = vmul.f32 %v700_v27, %v680_v11  ;;  %v734_v1 = vmul.f32 %v702_v61, %v682_v60  ;;  %v2901_v23 = vld [vmem:[%s3651_s1 + $0x3d8] sm:$0xff] }
  0xbf   : > { %1891 = vmatpush.bf16.msrb.mxu3 %v2836_v59  ;;  %v2868_v59 = vld [vmem:[%s3651_s1 + $0x2d0] sm:$0xff]  ;;  %v704_v26 = vperm.slane %v3458_v53, 5  ;;  %v706_v11 = vperm.slane %v3458_v53, 7 }
  0xc0   : > { %1853 = vmatpush.bf16.msrb.mxu0 %v2811_v28  ;;  %v2843_v28 = vld [vmem:[%s3651_s1 + $0x208] sm:$0xff]  ;;  %v747_v3 = vmax.f32 %v731_v63, 0.0  ;;  %v749_v4 = vmax.f32 %v733_v12, 0.0  ;;  %v748_v15 = vmax.f32 %v732_v29, 0.0  ;;  %v750_v16 = vmax.f32 %v734_v1, 0.0  ;;  %v2884_v10 = vld [vmem:[%s3651_s1 + $0x350] sm:$0xff] }
  0xc1   : > { %1866 = vmatpush.bf16.msrb.mxu1 %v2819_v62  ;;  %v2851_v62 = vld [vmem:[%s3651_s1 + $0x248] sm:$0xff]  ;;  %v2892_v27 = vld [vmem:[%s3651_s1 + $0x390] sm:$0xff] }
  0xc2   : > { %1879 = vmatpush.bf16.msrb.mxu2 %v2827_v0  ;;  %v2859_v0 = vld [vmem:[%s3651_s1 + $0x288] sm:$0xff]  ;;  %v2900_v60 = vld [vmem:[%s3651_s1 + $0x3d0] sm:$0xff] }
  0xc3   : > { %1892 = vmatpush.bf16.msrb.mxu3 %v2835_v22  ;;  %v2867_v22 = vld [vmem:[%s3651_s1 + $0x2c8] sm:$0xff] }
  0xc4   : > { %1854 = vmatpush.bf16.msrb.mxu0 %v2810_v30  ;;  %v2842_v30 = vld [vmem:[%s3651_s1 + $0x200] sm:$0xff] }
  0xc5   : > { %1867 = vmatpush.bf16.msrb.mxu1 %v2818_v2  ;;  %v2850_v2 = vld [vmem:[%s3651_s1 + $0x240] sm:$0xff] }
  0xc6   : > { %1880 = vmatpush.bf16.msrb.mxu2 %v2826_v13  ;;  %v2858_v13 = vld [vmem:[%s3651_s1 + $0x280] sm:$0xff] }
  0xc7   : > { %1893 = vmatpush.bf16.msrb.mxu3 %v2834_v14  ;;  %1855 = vmatmul.bf16.vlgmr.msrb.gmra.mxu0 %v759_v24  ;;  %v2866_v14 = vld [vmem:[%s3651_s1 + $0x2c0] sm:$0xff]  ;;  %v765_v24 = vpack.c.bf16 %v749_v4, %v749_v4 }
  0xc8   : > { %1899 = vmatpush.bf16.msra.mxu0 %v2849_v17  ;;  %1868 = vmatmul.bf16.vlgmr.msrb.gmra.mxu1 %v760_v32  ;;  %v2881_v17 = vld [vmem:[%s3651_s1 + $0x338] sm:$0xff]  ;;  %v766_v32 = vpack.c.bf16 %v750_v16, %v750_v16 }
  0xc9   : > { %1912 = vmatpush.bf16.msra.mxu1 %v2857_v18  ;;  %1881 = vmatmul.bf16.vlgmr.msrb.gmra.mxu2 %v761_v21  ;;  %v2889_v18 = vld [vmem:[%s3651_s1 + $0x378] sm:$0xff]  ;;  %v763_v21 = vpack.c.bf16 %v747_v3, %v747_v3 }
  0xca   : > { %1925 = vmatpush.bf16.msra.mxu2 %v2865_v19  ;;  %1894 = vmatmul.bf16.vlgmr.msrb.gmra.mxu3 %v762_v31  ;;  %v2897_v19 = vld [vmem:[%s3651_s1 + $0x3b8] sm:$0xff]  ;;  %v764_v31 = vpack.c.bf16 %v748_v15, %v748_v15 }
  0xcb   : > { %1938 = vmatpush.bf16.msra.mxu3 %v2873_v20  ;;  %v2905_v20 = vld [vmem:[%s3651_s1 + $0x3f8] sm:$0xff] }
  0xcc   : > { %1900 = vmatpush.bf16.msra.mxu0 %v2848_v33  ;;  %v2880_v33 = vld [vmem:[%s3651_s1 + $0x330] sm:$0xff] }
  0xcd   : > { %1913 = vmatpush.bf16.msra.mxu1 %v2856_v34  ;;  %v2888_v34 = vld [vmem:[%s3651_s1 + $0x370] sm:$0xff] }
  0xce   : > { %1926 = vmatpush.bf16.msra.mxu2 %v2864_v35  ;;  %v2896_v35 = vld [vmem:[%s3651_s1 + $0x3b0] sm:$0xff] }
  0xcf   : > { %1939 = vmatpush.bf16.msra.mxu3 %v2872_v36  ;;  %v2904_v36 = vld [vmem:[%s3651_s1 + $0x3f0] sm:$0xff] }
  0xd0   : > { %1901 = vmatpush.bf16.msra.mxu0 %v2847_v37  ;;  %v2879_v37 = vld [vmem:[%s3651_s1 + $0x328] sm:$0xff] }
  0xd1   : > { %1914 = vmatpush.bf16.msra.mxu1 %v2855_v38  ;;  %v2887_v38 = vld [vmem:[%s3651_s1 + $0x368] sm:$0xff] }
  0xd2   : > { %1927 = vmatpush.bf16.msra.mxu2 %v2863_v39  ;;  %v2895_v39 = vld [vmem:[%s3651_s1 + $0x3a8] sm:$0xff] }
  0xd3   : > { %1940 = vmatpush.bf16.msra.mxu3 %v2871_v40  ;;  %v2903_v40 = vld [vmem:[%s3651_s1 + $0x3e8] sm:$0xff] }
  0xd4   : > { %1902 = vmatpush.bf16.msra.mxu0 %v2846_v41  ;;  %v2878_v41 = vld [vmem:[%s3651_s1 + $0x320] sm:$0xff] }
  0xd5   : > { %1915 = vmatpush.bf16.msra.mxu1 %v2854_v42  ;;  %v2886_v42 = vld [vmem:[%s3651_s1 + $0x360] sm:$0xff] }
  0xd6   : > { %1928 = vmatpush.bf16.msra.mxu2 %v2862_v43  ;;  %v617_v43 = vld [vmem:[%s3650_s0 + $0x30] sm:$0xff] }
  0xd7   : > { %1941 = vmatpush.bf16.msra.mxu3 %v2870_v44  ;;  %v2894_v44 = vld [vmem:[%s3651_s1 + $0x3a0] sm:$0xff]  ;;  %v632_v7 = vunpack.c.h.bf16 %v617_v43 }
  0xd8   : > { %1903 = vmatpush.bf16.msra.mxu0 %v2845_v47  ;;  %v631_v47 = vunpack.c.l.bf16 %v617_v43 }
  0xd9   : > { %1916 = vmatpush.bf16.msra.mxu1 %v2853_v6  ;;  %v651_v6 = vperm.slane %v3439_v45, 4  ;;  %v684_v57 = vsub.f32 %v632_v7, %v652_v48 }
  0xda   : > { %1929 = vmatpush.bf16.msra.mxu2 %v2861_v52  ;;  %v633_v52 = vunpack.c.l.bf16 %v618_v46 }
  0xdb   : > { %1942 = vmatpush.bf16.msra.mxu3 %v2869_v8  ;;  %v653_v8 = vperm.slane %v3439_v45, 6  ;;  %v2876_v45 = vld [vmem:[%s3651_s1 + $0x310] sm:$0xff] }
  0xdc   : > { %1904 = vmatpush.bf16.msra.mxu0 %v2844_v9  ;;  %v683_v9 = vsub.f32 %v631_v47, %v651_v6 }
  0xdd   : > { %1917 = vmatpush.bf16.msra.mxu1 %v2852_v25  ;;  %v703_v25 = vperm.slane %v3458_v53, 4  ;;  %v685_v58 = vsub.f32 %v633_v52, %v653_v8 }
  0xde   : > { %1930 = vmatpush.bf16.msra.mxu2 %v2860_v50  ;;  %v705_v50 = vperm.slane %v3458_v53, 6  ;;  %v2883_v53 = vld [vmem:[%s3651_s1 + $0x348] sm:$0xff] }
  0xdf   : > { %1943 = vmatpush.bf16.msra.mxu3 %v2868_v59  ;;  %v686_v59 = vsub.f32 %v634_v54, %v654_v55  ;;  %v735_v61 = vmul.f32 %v703_v25, %v683_v9 }
  0xe0   : > { %1905 = vmatpush.bf16.msra.mxu0 %v2843_v28  ;;  %v736_v28 = vmul.f32 %v704_v26, %v684_v57  ;;  %v737_v63 = vmul.f32 %v705_v50, %v685_v58 }
  0xe1   : > { %1918 = vmatpush.bf16.msra.mxu1 %v2851_v62  ;;  %v2875_v62 = vld [vmem:[%s3651_s1 + $0x308] sm:$0xff]  ;;  %v738_v12 = vmul.f32 %v706_v11, %v686_v59  ;;  %v751_v29 = vmax.f32 %v735_v61, 0.0 }
  0xe2   : > { %1931 = vmatpush.bf16.msra.mxu2 %v2859_v0  ;;  %v2891_v0 = vld [vmem:[%s3651_s1 + $0x388] sm:$0xff]  ;;  %v752_v1 = vmax.f32 %v736_v28, 0.0  ;;  %v753_v3 = vmax.f32 %v737_v63, 0.0 }
  0xe3   : > { %1944 = vmatpush.bf16.msra.mxu3 %v2867_v22  ;;  %v2899_v22 = vld [vmem:[%s3651_s1 + $0x3c8] sm:$0xff]  ;;  %v754_v4 = vmax.f32 %v738_v12, 0.0  ;;  %v767_v15 = vpack.c.bf16 %v751_v29, %v751_v29 }
  0xe4   : > { %1906 = vmatpush.bf16.msra.mxu0 %v2842_v30  ;;  %v2874_v30 = vld [vmem:[%s3651_s1 + $0x300] sm:$0xff]  ;;  %v768_v16 = vpack.c.bf16 %v752_v1, %v752_v1 }
  0xe5   : > { %1919 = vmatpush.bf16.msra.mxu1 %v2850_v2  ;;  %v2882_v2 = vld [vmem:[%s3651_s1 + $0x340] sm:$0xff] }
  0xe6   : > { %1932 = vmatpush.bf16.msra.mxu2 %v2858_v13  ;;  %v2890_v13 = vld [vmem:[%s3651_s1 + $0x380] sm:$0xff] }
  0xe7   : > { %1945 = vmatpush.bf16.msra.mxu3 %v2866_v14  ;;  %1907 = vmatmul.bf16.vlgmr.msra.gmra.mxu0 %v763_v21  ;;  %v2898_v14 = vld [vmem:[%s3651_s1 + $0x3c0] sm:$0xff] }
  0xe8   : > { %1951 = vmatpush.bf16.msrb.mxu0 %v2881_v17  ;;  %1920 = vmatmul.bf16.vlgmr.msra.gmra.mxu1 %v764_v31  ;;  %v769_v17 = vpack.c.bf16 %v753_v3, %v753_v3 }
  0xe9   : > { %1964 = vmatpush.bf16.msrb.mxu1 %v2889_v18  ;;  %1933 = vmatmul.bf16.vlgmr.msra.gmra.mxu2 %v765_v24  ;;  %v770_v18 = vpack.c.bf16 %v754_v4, %v754_v4  ;;  %v2006_v4 = vld [vmem:[#allocation4] sm:$0x1] }
  0xea   : > { %1977 = vmatpush.bf16.msrb.mxu2 %v2897_v19  ;;  %1946 = vmatmul.bf16.vlgmr.msra.gmra.mxu3 %v766_v32 }
  0xeb   : > { %1990 = vmatpush.bf16.msrb.mxu3 %v2905_v20 }
  0xec   : > { %1952 = vmatpush.bf16.msrb.mxu0 %v2880_v33 }
  0xed   : > { %1965 = vmatpush.bf16.msrb.mxu1 %v2888_v34 }
  0xee   : > { %1978 = vmatpush.bf16.msrb.mxu2 %v2896_v35 }
  0xef   : > { %1991 = vmatpush.bf16.msrb.mxu3 %v2904_v36 }
  0xf0   : > { %1953 = vmatpush.bf16.msrb.mxu0 %v2879_v37 }
  0xf1   : > { %1966 = vmatpush.bf16.msrb.mxu1 %v2887_v38 }
  0xf2   : > { %1979 = vmatpush.bf16.msrb.mxu2 %v2895_v39 }
  0xf3   : > { %1992 = vmatpush.bf16.msrb.mxu3 %v2903_v40 }
  0xf4   : > { %1954 = vmatpush.bf16.msrb.mxu0 %v2878_v41 }
  0xf5   : > { %1967 = vmatpush.bf16.msrb.mxu1 %v2886_v42 }
  0xf6   : > { %1980 = vmatpush.bf16.msrb.mxu2 %v2894_v44 }
  0xf7   : > { %1993 = vmatpush.bf16.msrb.mxu3 %v2902_v5 }
  0xf8   : > { %1955 = vmatpush.bf16.msrb.mxu0 %v2877_v49 }
  0xf9   : > { %1968 = vmatpush.bf16.msrb.mxu1 %v2885_v51 }
  0xfa   : > { %1981 = vmatpush.bf16.msrb.mxu2 %v2893_v56 }
  0xfb   : > { %1994 = vmatpush.bf16.msrb.mxu3 %v2901_v23 }
  0xfc   : > { %1956 = vmatpush.bf16.msrb.mxu0 %v2876_v45 }
  0xfd   : > { %1969 = vmatpush.bf16.msrb.mxu1 %v2884_v10 }
  0xfe   : > { %1982 = vmatpush.bf16.msrb.mxu2 %v2892_v27 }
  0xff   : > { %1995 = vmatpush.bf16.msrb.mxu3 %v2900_v60 }
 0x100   : > { %1957 = vmatpush.bf16.msrb.mxu0 %v2875_v62 }
 0x101   : > { %1970 = vmatpush.bf16.msrb.mxu1 %v2883_v53 }
 0x102   : > { %1983 = vmatpush.bf16.msrb.mxu2 %v2891_v0 }
 0x103   : > { %1996 = vmatpush.bf16.msrb.mxu3 %v2899_v22 }
 0x104   : > { %1958 = vmatpush.bf16.msrb.mxu0 %v2874_v30 }
 0x105   : > { %1971 = vmatpush.bf16.msrb.mxu1 %v2882_v2 }
 0x106   : > { %1984 = vmatpush.bf16.msrb.mxu2 %v2890_v13 }
 0x107   : > { %1997 = vmatpush.bf16.msrb.mxu3 %v2898_v14  ;;  %1959 = vmatmul.bf16.vlgmr.msrb.gmra.mxu0 %v767_v15  ;;  %v2015_v15 = vld [vmem:[#allocation5] sm:$0x1] }
 0x108   : > { %1972 = vmatmul.bf16.vlgmr.msrb.gmra.mxu1 %v768_v16 }
 0x109   : > { %1985 = vmatmul.bf16.vlgmr.msrb.gmra.mxu2 %v769_v17 }
 0x10a   : > { %1998 = vmatmul.bf16.vlgmr.msrb.gmra.mxu3 %v770_v18 }
 0x124   : > { %v1804_v19 = vpop.f32.mrf.mxu0 }
 0x125   : > { %v1817_v20 = vpop.f32.mrf.mxu1 }
 0x126   : > { %v1818_v21 = vadd.f32 %v1817_v20, %v1804_v19 }
 0x12c   : > { %v1830_v24 = vpop.f32.mrf.mxu2  ;;  %v1806_v33 = vpop.f32.mrf.mxu0 }
 0x12d   : > { %v1831_v31 = vadd.f32 %v1830_v24, %v1818_v21  ;;  %v1843_v32 = vpop.f32.mrf.mxu3  ;;  %v1819_v35 = vpop.f32.mrf.mxu1 }
 0x12f   : > { %v1844_v34 = vadd.f32 %v1843_v32, %v1831_v31 }
 0x134   : > { %v1832_v36 = vpop.f32.mrf.mxu2 }
 0x135   : > { %v1845_v37 = vpop.f32.mrf.mxu3 }
 0x144   : > { %v1856_v38 = vpop.f32.mrf.mxu0 }
 0x145   : > { %v1869_v39 = vpop.f32.mrf.mxu1  ;;  %v1857_v6 = vadd.f32 %v1856_v38, %v1844_v34 }
 0x147   : > { %v1870_v51 = vadd.f32 %v1869_v39, %v1857_v6 }
 0x14c   : > { %v1882_v40 = vpop.f32.mrf.mxu2  ;;  %v1858_v42 = vpop.f32.mrf.mxu0 }
 0x14d   : > { %v1895_v41 = vpop.f32.mrf.mxu3  ;;  %v1871_v43 = vpop.f32.mrf.mxu1  ;;  %v1883_v8 = vadd.f32 %v1882_v40, %v1870_v51 }
 0x14f   : > { %v1896_v56 = vadd.f32 %v1895_v41, %v1883_v8 }
 0x154   : > { %v1884_v44 = vpop.f32.mrf.mxu2 }
 0x155   : > { %v1897_v5 = vpop.f32.mrf.mxu3 }
 0x164   : > { %v1908_v46 = vpop.f32.mrf.mxu0 }
 0x165   : > { %v1921_v47 = vpop.f32.mrf.mxu1  ;;  %v1909_v23 = vadd.f32 %v1908_v46, %v1896_v56 }
 0x167   : > { %v1922_v9 = vadd.f32 %v1921_v47, %v1909_v23 }
 0x16c   : > { %v1934_v7 = vpop.f32.mrf.mxu2  ;;  %v1910_v49 = vpop.f32.mrf.mxu0 }
 0x16d   : > { %v1947_v48 = vpop.f32.mrf.mxu3  ;;  %v1923_v52 = vpop.f32.mrf.mxu1  ;;  %v1935_v25 = vadd.f32 %v1934_v7, %v1922_v9 }
 0x16f   : > { %v1948_v57 = vadd.f32 %v1947_v48, %v1935_v25 }
 0x174   : > { %v1936_v54 = vpop.f32.mrf.mxu2 }
 0x175   : > { %v1949_v55 = vpop.f32.mrf.mxu3 }
 0x184   : > { %v1960_v26 = vpop.f32.mrf.mxu0 }
 0x185   : > { %v1973_v45 = vpop.f32.mrf.mxu1  ;;  %v1961_v10 = vadd.f32 %v1960_v26, %v1948_v57 }
 0x187   : > { %v1974_v58 = vadd.f32 %v1973_v45, %v1961_v10 }
 0x18c   : > { %v1986_v50 = vpop.f32.mrf.mxu2  ;;  %v1962_v27 = vpop.f32.mrf.mxu0 }
 0x18d   : > { %v1999_v59 = vpop.f32.mrf.mxu3  ;;  %v1987_v11 = vadd.f32 %v1986_v50, %v1974_v58  ;;  %v1975_v60 = vpop.f32.mrf.mxu1 }
 0x18f   : > { %v2000_v61 = vadd.f32 %v1999_v59, %v1987_v11 }
 0x191   : > { %2005 = vst [vmem:[#allocation6] sm:$0xff] %v2000_v61  ;;  %v2007_v28 = vrot.slane %v2000_v61, 4  ;;  %v2016_v62 = vmul.f32 %v2000_v61, %v2000_v61 }
 0x193   : > { %v2008_v53 = vadd.f32 %v2007_v28, %v2000_v61  ;;  %v2017_v63 = vrot.slane %v2016_v62, 4 }
 0x194   : > { %v1988_v12 = vpop.f32.mrf.mxu2 }
 0x195   : > { %v2001_v0 = vpop.f32.mrf.mxu3  ;;  %v2009_v22 = vrot.slane %v2008_v53, 2  ;;  %v2018_v29 = vadd.f32 %v2017_v63, %v2016_v62 }
 0x197   : > { %v2010_v1 = vadd.f32 %v2009_v22, %v2008_v53  ;;  %v2019_v30 = vrot.slane %v2018_v29, 2 }
 0x199   : > { %v2011_v2 = vrot.slane %v2010_v1, 1  ;;  %v2020_v3 = vadd.f32 %v2019_v30, %v2018_v29 }
 0x19b   : > { %v2012_v13 = vadd.f32 %v2011_v2, %v2010_v1  ;;  %v2021_v14 = vrot.slane %v2020_v3, 1 }
 0x19d   : > { %v2013_v16 = vadd.f32 %v2012_v13, %v2006_v4  ;;  %v2022_v17 = vadd.f32 %v2021_v14, %v2020_v3 }
 0x19f   : > { %2014 = vst [vmem:[#allocation4] sm:$0x1] %v2013_v16  ;;  %v2023_v18 = vadd.f32 %v2022_v17, %v2015_v15 }
 0x1a1   : > { %2024 = vst [vmem:[#allocation5] sm:$0x1] %v2023_v18 }
 0x1a2 PF: > { %p2025_p7 = scmp.eq.s32.totalorder %s2962_s12, 2 }
 0x1a4   : > { %2029 = sbr.rel (!%p2025_p7) target bundleno = 452 (0x1c4), region = 52 }
 0x1a6   : > { %v2030_v19 = vld [vmem:[#allocation4] sm:$0x1] (%p2025_p7) }
 0x1a7   : > { %v2031_v21 = vmul.f32 (%p2025_p7), 0.125, %v2030_v19 }
 0x1a8   : > { %v2032_v20 = vld [vmem:[#allocation5] sm:$0x1] (%p2025_p7) }
 0x1a9   : > { %v2033_v24 = vmul.f32 0.125, %v2032_v20  ;;  %v2034_v31 = vmul.f32 %v2031_v21, %v2031_v21  ;;  %2037 = vst [vmem:[#allocation4] sm:$0x1] %v2031_v21 }
 0x1ab   : > { %v2035_v32 = vsub.f32 %v2033_v24, %v2034_v31 }
 0x1ad   : > { %v2036_v33 = vmax.f32 %v2035_v32, 0.0 }
 0x1af   : > { %v2038_v34 = vadd.f32 1e-05, %v2036_v33 }
 0x1b1   : > { %2944 = vrsqrt.f32 %v2038_v34  ;;  %vm2045_vm13 = vweird.f32 %v2038_v34 }
 0x1b7   : > { %v2945_v35 = vpop.eup %2944 }
 0x1b8   : > { %v2040_v36 = vmul.f32 %v2945_v35, %v2038_v34  ;;  %vm2046_vm14 = vweird.f32 %v2945_v35 }
 0x1b9   : > { %vm2047_vm15 = vmor %vm2045_vm13, %vm2046_vm14 }
 0x1ba   : > { %v2041_v37 = vmul.f32 %v2945_v35, %v2040_v36 }
 0x1bc   : > { %v2042_v38 = vmul.f32 0.5, %v2041_v37 }
 0x1be   : > { %v2043_v39 = vsub.f32 1.5, %v2042_v38 }
 0x1c0   : > { %v2044_v40 = vmul.f32 %v2945_v35, %v2043_v39 }
 0x1c2   : > { %v2048_v41 = vsel %vm2047_vm15, %v2945_v35, %v2044_v40 }
 0x1c3   : > { %2049 = vst [vmem:[#allocation5] sm:$0x1] %v2048_v41 }
 0x1c4 PF: > { %p2740_p8 = scmp.ne.s32.totalorder %s2962_s12, 2 }
 0x1c6   : > { %2052 = sbr.rel (%p2740_p8) target bundleno = 625 (0x271), region = 56 }
 0x1cb   : > { %v2914_v42 = vld [vmem:[%s3652_s2 + $0x38] sm:$0xff]  ;;  %v2913_v43 = vld [vmem:[%s3652_s2 + $0x30] sm:$0xff]  ;;  %v2912_v44 = vld [vmem:[%s3652_s2 + $0x28] sm:$0xff] }
 0x1cc   : > { %2132 = vmatpush.bf16.msra.mxu0 %v2914_v42  ;;  %v2911_v5 = vld [vmem:[%s3652_s2 + $0x20] sm:$0xff]  ;;  %v2910_v47 = vld [vmem:[%s3652_s2 + $0x18] sm:$0xff]  ;;  %v2909_v49 = vld [vmem:[%s3652_s2 + $0x10] sm:$0xff] }
 0x1cd   : > { %v2946_v46 = vld [vmem:[#allocation4] ss:$0 sm:$0xff]  ;;  %v2055_v6 = vld [vmem:[#allocation6] sm:$0xff]  ;;  %v2947_v48 = vld [vmem:[#allocation5] ss:$0 sm:$0xff] }
 0x1ce   : > { %v2060_v7 = vsub.f32 %v2055_v6, %v2946_v46  ;;  %v2908_v52 = vld [vmem:[%s3652_s2 + $0x8] sm:$0xff]  ;;  %v2907_v54 = vld [vmem:[%s3652_s2] sm:$0xff] }
 0x1d0   : > { %2133 = vmatpush.bf16.msra.mxu0 %v2913_v43  ;;  %v2065_v51 = vmul.f32 %v2947_v48, %v2060_v7 }
 0x1d2   : > { %v2066_v8 = vmax.f32 %v2065_v51, 0.0 }
 0x1d4   : > { %2134 = vmatpush.bf16.msra.mxu0 %v2912_v44  ;;  %v2067_v55 = vpack.c.bf16 %v2066_v8, %v2066_v8 }
 0x1d8   : > { %2135 = vmatpush.bf16.msra.mxu0 %v2911_v5 }
 0x1dc   : > { %2136 = vmatpush.bf16.msra.mxu0 %v2910_v47 }
 0x1e0   : > { %2137 = vmatpush.bf16.msra.mxu0 %v2909_v49 }
 0x1e4   : > { %2138 = vmatpush.bf16.msra.mxu0 %v2908_v52 }
 0x1e8   : > { %2139 = vmatpush.bf16.msra.mxu0 %v2907_v54 }
 0x1eb   : > { %2140 = vmatmul.bf16.vlgmr.msra.gmra.mxu0 %v2067_v55 }
 0x268   : > { %v2141_v56 = vpop.f32.mrf.mxu0 }
 0x269   : > { %2145 = vst [vmem:[%s3653_s3] sm:$0xff] %v2141_v56 }
 0x270   : > { %v2143_v23 = vpop.f32.mrf.mxu0 }
 0x271 PF: > { %s13_s14 = sadd.s32 1, %s2970_s14   ;;  %s3654_s12 = smov %s2966_s13 }
 0x272   : > { %p10_p9 = scmp.ge.s32.totalorder %s13_s14, 5   ;;  %s3655_s13 = smov %s3657_s15 }
 0x274   :  { %12 = sbr.rel (!%p10_p9) target bundleno = 2 (0x2), region = 88 }

</bundles_post_ra>
